<compile_context>
chip_gen: v6e
topology: v6e:2x2x1
jax: 0.10.0
libtpu: 0.0.40
codegen_flags: <defaults>
</compile_context>

<pallas_src>
from functools import partial

import numpy as np
import jax
import jax.numpy as jnp
from jax import lax
from jax.experimental import pallas as pl
from jax.experimental.pallas import tpu as pltpu

CHANNELS = (4, 8, 8, 16, 6)            # 4 conv widths + num_classes
IN_SHAPE = (2, 1, 32, 8)               # NCHW (batch, channel, time, sensor feat)
B, C_IN, H_TIME, W_SENS = IN_SHAPE
H_INS = (H_TIME, H_TIME // 2, H_TIME // 4, H_TIME // 8)          # 32, 16, 8, 4
H_OUTS = (H_TIME // 2, H_TIME // 4, H_TIME // 8, H_TIME // 16)   # 16, 8, 4, 2
ROWS = tuple(-(-(h + 2) // 8) * 8 for h in H_INS)                # 40, 24, 16, 8
LANES = 128                            # lane-dense packed (width, channel) axis
BN_EPS = 1e-5

_VMEM = pl.BlockSpec(memory_space=pltpu.MemorySpace.VMEM)


# ----------------------------------------------------------------------------
# Pallas kernels
# ----------------------------------------------------------------------------
def _fused_stack_kernel(x_ref,
                        wb1, sc1, sh1, wb2, sc2, sh2,
                        wb3, sc3, sh3, wb4, sc4, sh4,
                        o1, o2, o3, o4,
                        xp2, xp3, xp4, y_scr):
    """Four Conv(3x3,pad=1)+BN+ReLU+MaxPool((2,1)) layers for ONE batch item.

    grid = (B,): one batch item per grid step (one per TensorCore on v7x).

    Layouts:
      activations : (ROWS_l, 128) bf16; rows = [top pad | h_in data | bottom pad |
                    zero fill to a multiple of 8]; lanes = w*C + c packed at lane 0,
                    zero padded to 128 (dense unmasked vregs / stores).
      wb{l}       : (3, 128, 128) bf16 banded weights, one (K, N) slab per kh tap
                    (kw taps + lane padding folded host-side).
      sc/sh{l}    : (1, 128) f32 folded BN scale / (conv bias + BN) shift.
      o{l}        : (1, h_out, 128) f32 pooled feature-map slab (lane padded).
      xp{2..4}    : bf16 scratch holding the next layer's zero-padded input.
      y_scr       : f32 scratch for the pre-pool activation (strided pool reads).
    """

    def layer(src, wb, sc, sh, dst, nxt, h_in):
        # 3x3 conv == 3 full-extent, sublane/lane-aligned MXU matmuls (one per
        # kh tap; the 3 kw taps live in the banded weights).  The kh row shift
        # is applied on the f32 accumulators, never on a matmul operand.
        a0 = jnp.dot(src, wb[0], preferred_element_type=jnp.float32)
        a1 = jnp.dot(src, wb[1], preferred_element_type=jnp.float32)
        a2 = jnp.dot(src, wb[2], preferred_element_type=jnp.float32)
        conv = a0[0:h_in] + a1[1:h_in + 1] + a2[2:h_in + 2]        # (h_in, 128)
        # Folded BatchNorm (+conv bias) + ReLU, in f32.
        y = jnp.maximum(conv * sc[...] + sh[...], 0.0)
        # MaxPool2d((2,1),(2,1)): one slab store + two stride-2 reads + one max.
        h_out = h_in // 2
        y_scr[0:h_in, :] = y
        pooled = jnp.maximum(y_scr[pl.ds(0, h_out, stride=2), :],
                             y_scr[pl.ds(1, h_out, stride=2), :])  # (h_out, 128)
        dst[0, :, :] = pooled
        if nxt is None:
            return None
        # Seed the next layer's zero-padded input: interior at row 1 / lane 0;
        # only the border/tail rows are zeroed (interior is overwritten anyway).
        rows_n = nxt.shape[0]
        nxt[0:1, :] = jnp.zeros((1, LANES), nxt.dtype)
        nxt[1:1 + h_out, :] = pooled.astype(nxt.dtype)
        nxt[1 + h_out:rows_n, :] = jnp.zeros((rows_n - 1 - h_out, LANES),
                                             nxt.dtype)
        return nxt[...]

    src = layer(x_ref[0], wb1, sc1, sh1, o1, xp2, H_INS[0])
    src = layer(src, wb2, sc2, sh2, o2, xp3, H_INS[1])
    src = layer(src, wb3, sc3, sh3, o3, xp4, H_INS[2])
    layer(src, wb4, sc4, sh4, o4, None, H_INS[3])


def _classifier_kernel(x_ref, w_ref, b_ref, o_ref):
    """Classifier: (B, F) @ (F, 128-padded) + (1, 128-padded); lane-dense store."""
    o_ref[...] = (jnp.dot(x_ref[...], w_ref[...],
                          preferred_element_type=jnp.float32) + b_ref[...])


# ----------------------------------------------------------------------------
# Wrappers
# ----------------------------------------------------------------------------
def _fused_stack(x_packed, kp):
    out_shape = tuple(
        jax.ShapeDtypeStruct((B, h, LANES), jnp.float32) for h in H_OUTS)
    w_spec = pl.BlockSpec((3, LANES, LANES), lambda b: (0, 0, 0))
    v_spec = pl.BlockSpec((1, LANES), lambda b: (0, 0))
    in_specs = [pl.BlockSpec((1, ROWS[0], LANES), lambda b: (b, 0, 0))]
    args = [x_packed]
    for wb, sc, sh in zip(kp["wb"], kp["sc"], kp["sh"]):
        in_specs += [w_spec, v_spec, v_spec]
        args += [wb, sc, sh]
    out_specs = tuple(
        pl.BlockSpec((1, h, LANES), lambda b: (b, 0, 0)) for h in H_OUTS)
    scratch = [
        pltpu.VMEM((ROWS[1], LANES), jnp.bfloat16),   # layer-2 padded input
        pltpu.VMEM((ROWS[2], LANES), jnp.bfloat16),   # layer-3 padded input
        pltpu.VMEM((ROWS[3], LANES), jnp.bfloat16),   # layer-4 padded input
        pltpu.VMEM((H_INS[0], LANES), jnp.float32),   # pre-pool activation
    ]
    return pl.pallas_call(
        _fused_stack_kernel,
        out_shape=out_shape,
        grid=(B,),
        in_specs=in_specs,
        out_specs=out_specs,
        scratch_shapes=scratch,
        compiler_params=pltpu.CompilerParams(
            dimension_semantics=("parallel",)),   # v7x: one batch item per TC
    )(*args)


def _classifier(x_flat, kp):
    n_pad = kp["cls_wT"].shape[1]                 # 128 (caller slices to 6)
    return pl.pallas_call(
        _classifier_kernel,
        out_shape=jax.ShapeDtypeStruct((x_flat.shape[0], n_pad), jnp.float32),
        in_specs=[_VMEM, _VMEM, _VMEM],
        out_specs=_VMEM,
    )(x_flat, kp["cls_wT"], kp["cls_b"])


@partial(jax.jit, static_argnames=("hierarchical",))
def convnet_forward(x_nchw, kp, hierarchical=False):
    """Mirrors ConvNetwith3x3.forward (hierarchical -> feature maps, else logits)."""
    bsz = x_nchw.shape[0]
    if hierarchical:
        # NCHW -> lane/row padded packing: rows = padded time (mult of 8),
        # lanes = w*C + c at lane 0, zero padded to 128.
        c_in = x_nchw.shape[1]
        xn = jnp.transpose(x_nchw, (0, 2, 3, 1)).reshape(bsz, H_TIME, W_SENS * c_in)
        xp = jnp.zeros((bsz, ROWS[0], LANES), jnp.float32)
        xp = xp.at[:, 1:1 + H_TIME, :W_SENS * c_in].set(xn)
        outs = _fused_stack(xp.astype(jnp.bfloat16), kp)
        feats = []
        for o, h, c in zip(outs, H_OUTS, CHANNELS[:4]):
            # Drop lane padding, then reshape to NCHW (layout plumbing only).
            feats.append(o[:, :, :W_SENS * c].reshape(bsz, h, W_SENS, c)
                         .transpose(0, 3, 1, 2))
        return feats
    # use_adativeavg=False -> adaptiveAvg is nn.Identity(); the non-hierarchical
    # PyTorch forward applies Identity -> view(B, -1) -> classifier only.
    xf = x_nchw.reshape(bsz, -1)
    logits = _classifier(xf, kp)
    return logits[:, :CHANNELS[4]]


# ----------------------------------------------------------------------------
# Parameters: PyTorch-like init, then one-time folding into the kernel layout
# ----------------------------------------------------------------------------
def init_params(key):
    keys = jax.random.split(key, 20)
    layers = []
    cins = (1,) + CHANNELS[:3]
    ki = 0
    for cin, cout in zip(cins, CHANNELS[:4]):
        w = 0.1 * jax.random.normal(keys[ki], (cout, cin, 3, 3), jnp.float32); ki += 1
        bias = 0.05 * jax.random.normal(keys[ki], (cout,), jnp.float32); ki += 1
        gamma = 1.0 + 0.1 * jax.random.normal(keys[ki], (cout,), jnp.float32); ki += 1
        beta = 0.1 * jax.random.normal(keys[ki], (cout,), jnp.float32); ki += 1
        mean = 0.05 * jnp.arange(cout, dtype=jnp.float32)
        var = 1.0 + 0.01 * jnp.arange(cout, dtype=jnp.float32)
        layers.append((w, bias, gamma, beta, mean, var))

    h_out, w_out = H_TIME // 16, W_SENS            # GetFeatureMapSize(padding=True)
    cls_in = CHANNELS[3] * h_out * w_out           # == C*H*W of the raw input
    cls_w = 0.05 * jax.random.normal(keys[16], (CHANNELS[4], cls_in), jnp.float32)
    cls_b = 0.01 * jnp.arange(CHANNELS[4], dtype=jnp.float32)
    return {"layers": layers, "cls_w": cls_w, "cls_b": cls_b}


def fold_params(params):
    """One-time host-side folding into the kernel's packed/banded/padded layout."""
    wb_l, sc_l, sh_l = [], [], []
    for (w, bias, gamma, beta, mean, var) in params["layers"]:
        w_np = np.asarray(w, np.float32)
        cout, cin = w_np.shape[0], w_np.shape[1]
        # Banded weights over the lane-packed (w, c) axis, interior at lane 0,
        # zero padded to a dense 128x128 (K, N) slab per kh tap:
        #   wb[kh][wi*cin+ci, wo*cout+co] = w[co, ci, kh, wi - wo + 1]
        wb = np.zeros((3, LANES, LANES), np.float32)
        for kh in range(3):
            for kw in range(3):
                band = np.eye(W_SENS, W_SENS, k=1 - kw, dtype=np.float32)
                wb[kh, :W_SENS * cin, :W_SENS * cout] += np.kron(
                    band, w_np[:, :, kh, kw].T)
        scale = np.asarray(gamma, np.float32) / np.sqrt(
            np.asarray(var, np.float32) + BN_EPS)
        shift = (np.asarray(beta, np.float32)
                 + (np.asarray(bias, np.float32)
                    - np.asarray(mean, np.float32)) * scale)
        sc = np.zeros((1, LANES), np.float32)
        sh = np.zeros((1, LANES), np.float32)
        sc[0, :W_SENS * cout] = np.tile(scale, W_SENS)
        sh[0, :W_SENS * cout] = np.tile(shift, W_SENS)
        wb_l.append(jnp.asarray(wb, jnp.bfloat16))      # bf16 MXU operands
        sc_l.append(jnp.asarray(sc))
        sh_l.append(jnp.asarray(sh))

    # Classifier weights: lane-pad the output dim 6 -> 128 (sliced in wrapper).
    cls_w = np.asarray(params["cls_w"], np.float32)     # (6, 256)
    cls_wT = np.zeros((cls_w.shape[1], LANES), np.float32)
    cls_wT[:, :cls_w.shape[0]] = cls_w.T
    cls_b = np.zeros((1, LANES), np.float32)
    cls_b[0, :cls_w.shape[0]] = np.asarray(params["cls_b"], np.float32)
    return {"wb": wb_l, "sc": sc_l, "sh": sh_l,
            "cls_wT": jnp.asarray(cls_wT), "cls_b": jnp.asarray(cls_b)}


# ----------------------------------------------------------------------------
# Plain-JAX reference (sanity check of the Pallas path)
# ----------------------------------------------------------------------------
def reference_hierarchical(x_nchw, params, quantize=False):
    """quantize=True applies the same bf16 operand rounding the kernel uses."""
    q = ((lambda a: a.astype(jnp.bfloat16).astype(jnp.float32))
         if quantize else (lambda a: a))
    x = q(jnp.transpose(x_nchw, (0, 2, 3, 1)))
    feats = []
    for (w, bias, gamma, beta, mean, var) in params["layers"]:
        wk = q(jnp.transpose(w, (2, 3, 1, 0)))           # HWIO
        y = lax.conv_general_dilated(
            x, wk, window_strides=(1, 1), padding=((1, 1), (1, 1)),
            dimension_numbers=("NHWC", "HWIO", "NHWC"),
            precision=lax.Precision.HIGHEST)
        y = y + bias
        y = (y - mean) / jnp.sqrt(var + BN_EPS) * gamma + beta
        y = jnp.maximum(y, 0.0)
        y = jnp.maximum(y[:, 0::2], y[:, 1::2])          # MaxPool2d((2,1),(2,1))
        feats.append(jnp.transpose(y, (0, 3, 1, 2)))
        x = q(y)
    return feats


if __name__ == "__main__":
    key = jax.random.PRNGKey(0)
    kx, kparam = jax.random.split(key)
    x = jax.random.normal(kx, IN_SHAPE, jnp.float32)   # NCHW (B, C, time, feat)
    params = init_params(kparam)
    kp = fold_params(params)                            # one-time folding

    feats = convnet_forward(x, kp, hierarchical=True)
    logits = convnet_forward(x, kp, hierarchical=False)
    jax.block_until_ready(feats)
    jax.block_until_ready(logits)

    assert [tuple(f.shape) for f in feats] == [
        (2, 4, 16, 8), (2, 8, 8, 8), (2, 8, 4, 8), (2, 16, 2, 8)], \
        [tuple(f.shape) for f in feats]
    assert tuple(logits.shape) == (2, CHANNELS[4])

    # Tight check vs. a reference with the same bf16 operand rounding
    # (remaining differences are f32 accumulation order only).
    ref_q = reference_hierarchical(x, params, quantize=True)
    for a, b in zip(feats, ref_q):
        err = float(jnp.max(jnp.abs(a - b)))
        assert jnp.allclose(a, b, atol=5e-3, rtol=5e-3), err
    # Loose sanity check vs. the full-f32 reference (bounds bf16 rounding error).
    ref_f = reference_hierarchical(x, params, quantize=False)
    for a, b in zip(feats, ref_f):
        err = float(jnp.max(jnp.abs(a - b)))
        assert jnp.allclose(a, b, atol=5e-2, rtol=5e-2), err

    # Cross-check classifier (kernel matmul is f32).
    ref_logits = (jnp.dot(x.reshape(x.shape[0], -1), params["cls_w"].T,
                          precision=lax.Precision.HIGHEST) + params["cls_b"])
    assert jnp.allclose(logits, ref_logits, atol=1e-3, rtol=1e-3)

    print("KERNEL_OK")
</pallas_src>

<mosaic_0001>
module attributes {stable_mosaic.version = 11 : i64} {
  func.func @_fused_stack_kernel(%arg0: i32, %arg1: memref<1x40x128xbf16, #tpu.memory_space<vmem>>, %arg2: memref<3x128x128xbf16, #tpu.memory_space<vmem>>, %arg3: memref<1x128xf32, #tpu.memory_space<vmem>>, %arg4: memref<1x128xf32, #tpu.memory_space<vmem>>, %arg5: memref<3x128x128xbf16, #tpu.memory_space<vmem>>, %arg6: memref<1x128xf32, #tpu.memory_space<vmem>>, %arg7: memref<1x128xf32, #tpu.memory_space<vmem>>, %arg8: memref<3x128x128xbf16, #tpu.memory_space<vmem>>, %arg9: memref<1x128xf32, #tpu.memory_space<vmem>>, %arg10: memref<1x128xf32, #tpu.memory_space<vmem>>, %arg11: memref<3x128x128xbf16, #tpu.memory_space<vmem>>, %arg12: memref<1x128xf32, #tpu.memory_space<vmem>>, %arg13: memref<1x128xf32, #tpu.memory_space<vmem>>, %arg14: memref<1x16x128xf32, #tpu.memory_space<vmem>>, %arg15: memref<1x8x128xf32, #tpu.memory_space<vmem>>, %arg16: memref<1x4x128xf32, #tpu.memory_space<vmem>>, %arg17: memref<1x2x128xf32, #tpu.memory_space<vmem>>, %arg18: memref<24x128xbf16, #tpu.memory_space<vmem>>, %arg19: memref<16x128xbf16, #tpu.memory_space<vmem>>, %arg20: memref<8x128xbf16, #tpu.memory_space<vmem>>, %arg21: memref<32x128xf32, #tpu.memory_space<vmem>>) attributes {dimension_semantics = [#tpu.dimension_semantics<parallel>], iteration_bounds = array<i64: 2>, scalar_prefetch = 0 : i64, scratch_operands = 4 : i64, tpu.core_type = #tpu.core_type<tc>, window_params = [{transform_indices = @transform_0, window_bounds = array<i64: 1, 40, 128>}, {pipeline_mode = #tpu.pipeline_mode<synchronous>, transform_indices = @transform_1, window_bounds = array<i64: 3, 128, 128>}, {pipeline_mode = #tpu.pipeline_mode<synchronous>, transform_indices = @transform_2, window_bounds = array<i64: 1, 128>}, {pipeline_mode = #tpu.pipeline_mode<synchronous>, transform_indices = @transform_3, window_bounds = array<i64: 1, 128>}, {pipeline_mode = #tpu.pipeline_mode<synchronous>, transform_indices = @transform_4, window_bounds = array<i64: 3, 128, 128>}, {pipeline_mode = #tpu.pipeline_mode<synchronous>, transform_indices = @transform_5, window_bounds = array<i64: 1, 128>}, {pipeline_mode = #tpu.pipeline_mode<synchronous>, transform_indices = @transform_6, window_bounds = array<i64: 1, 128>}, {pipeline_mode = #tpu.pipeline_mode<synchronous>, transform_indices = @transform_7, window_bounds = array<i64: 3, 128, 128>}, {pipeline_mode = #tpu.pipeline_mode<synchronous>, transform_indices = @transform_8, window_bounds = array<i64: 1, 128>}, {pipeline_mode = #tpu.pipeline_mode<synchronous>, transform_indices = @transform_9, window_bounds = array<i64: 1, 128>}, {pipeline_mode = #tpu.pipeline_mode<synchronous>, transform_indices = @transform_10, window_bounds = array<i64: 3, 128, 128>}, {pipeline_mode = #tpu.pipeline_mode<synchronous>, transform_indices = @transform_11, window_bounds = array<i64: 1, 128>}, {pipeline_mode = #tpu.pipeline_mode<synchronous>, transform_indices = @transform_12, window_bounds = array<i64: 1, 128>}, {transform_indices = @transform_13, window_bounds = array<i64: 1, 16, 128>}, {transform_indices = @transform_14, window_bounds = array<i64: 1, 8, 128>}, {transform_indices = @transform_15, window_bounds = array<i64: 1, 4, 128>}, {transform_indices = @transform_16, window_bounds = array<i64: 1, 2, 128>}]} {
    %c0 = arith.constant 0 : index
    %c0_0 = arith.constant 0 : index
    %c0_1 = arith.constant 0 : index
    %0 = vector.load %arg1[%c0, %c0_0, %c0_1] : memref<1x40x128xbf16, #tpu.memory_space<vmem>>, vector<1x40x128xbf16>
    %1 = vector.shape_cast %0 : vector<1x40x128xbf16> to vector<40x128xbf16>
    %c0_2 = arith.constant 0 : index
    %c0_3 = arith.constant 0 : index
    %c0_4 = arith.constant 0 : index
    %2 = vector.load %arg2[%c0_2, %c0_3, %c0_4] : memref<3x128x128xbf16, #tpu.memory_space<vmem>>, vector<1x128x128xbf16>
    %3 = vector.shape_cast %2 : vector<1x128x128xbf16> to vector<128x128xbf16>
    %cst = arith.constant dense<0.000000e+00> : vector<40x128xf32>
    %4 = tpu.matmul %1, %3, %cst {dimension_numbers = #tpu.dot_dimension_numbers<[1], [0], [0], [1], [0, 0, 1, 1], [], []>} : vector<40x128xbf16>, vector<128x128xbf16>, vector<40x128xf32> -> vector<40x128xf32>
    %c1 = arith.constant 1 : index
    %c0_5 = arith.constant 0 : index
    %c0_6 = arith.constant 0 : index
    %5 = vector.load %arg2[%c1, %c0_5, %c0_6] : memref<3x128x128xbf16, #tpu.memory_space<vmem>>, vector<1x128x128xbf16>
    %6 = vector.shape_cast %5 : vector<1x128x128xbf16> to vector<128x128xbf16>
    %cst_7 = arith.constant dense<0.000000e+00> : vector<40x128xf32>
    %7 = tpu.matmul %1, %6, %cst_7 {dimension_numbers = #tpu.dot_dimension_numbers<[1], [0], [0], [1], [0, 0, 1, 1], [], []>} : vector<40x128xbf16>, vector<128x128xbf16>, vector<40x128xf32> -> vector<40x128xf32>
    %c2 = arith.constant 2 : index
    %c0_8 = arith.constant 0 : index
    %c0_9 = arith.constant 0 : index
    %8 = vector.load %arg2[%c2, %c0_8, %c0_9] : memref<3x128x128xbf16, #tpu.memory_space<vmem>>, vector<1x128x128xbf16>
    %9 = vector.shape_cast %8 : vector<1x128x128xbf16> to vector<128x128xbf16>
    %cst_10 = arith.constant dense<0.000000e+00> : vector<40x128xf32>
    %10 = tpu.matmul %1, %9, %cst_10 {dimension_numbers = #tpu.dot_dimension_numbers<[1], [0], [0], [1], [0, 0, 1, 1], [], []>} : vector<40x128xbf16>, vector<128x128xbf16>, vector<40x128xf32> -> vector<40x128xf32>
    %11 = vector.extract_strided_slice %4 {offsets = [0, 0], sizes = [32, 128], strides = [1, 1]} : vector<40x128xf32> to vector<32x128xf32>
    %12 = vector.extract_strided_slice %7 {offsets = [1, 0], sizes = [32, 128], strides = [1, 1]} : vector<40x128xf32> to vector<32x128xf32>
    %13 = arith.addf %11, %12 : vector<32x128xf32>
    %14 = vector.extract_strided_slice %10 {offsets = [2, 0], sizes = [32, 128], strides = [1, 1]} : vector<40x128xf32> to vector<32x128xf32>
    %15 = arith.addf %13, %14 : vector<32x128xf32>
    %c0_11 = arith.constant 0 : index
    %c0_12 = arith.constant 0 : index
    %16 = vector.load %arg3[%c0_11, %c0_12] : memref<1x128xf32, #tpu.memory_space<vmem>>, vector<1x128xf32>
    %17 = vector.broadcast %16 : vector<1x128xf32> to vector<32x128xf32>
    %18 = arith.mulf %15, %17 : vector<32x128xf32>
    %c0_13 = arith.constant 0 : index
    %c0_14 = arith.constant 0 : index
    %19 = vector.load %arg4[%c0_13, %c0_14] : memref<1x128xf32, #tpu.memory_space<vmem>>, vector<1x128xf32>
    %20 = vector.broadcast %19 : vector<1x128xf32> to vector<32x128xf32>
    %21 = arith.addf %18, %20 : vector<32x128xf32>
    %cst_15 = arith.constant 0.000000e+00 : f32
    %22 = vector.broadcast %cst_15 : f32 to vector<32x128xf32>
    %23 = arith.maximumf %21, %22 : vector<32x128xf32>
    %c0_16 = arith.constant 0 : index
    %c0_17 = arith.constant 0 : index
    %24 = vector.load %arg21[%c0_16, %c0_17] : memref<32x128xf32, #tpu.memory_space<vmem>>, vector<32x128xf32>
    tpu.vector_store %arg21[%c0_16, %c0_17], %23 {strides = array<i32>} : memref<32x128xf32, #tpu.memory_space<vmem>>, vector<32x128xf32>,
    %c0_18 = arith.constant 0 : index
    %c0_19 = arith.constant 0 : index
    %25 = tpu.strided_load %arg21[%c0_18, %c0_19] {strides = array<i32: 2, 1>} : memref<32x128xf32, #tpu.memory_space<vmem>>, vector<16x128xf32>
    %c1_20 = arith.constant 1 : index
    %c0_21 = arith.constant 0 : index
    %26 = tpu.strided_load %arg21[%c1_20, %c0_21] {strides = array<i32: 2, 1>} : memref<32x128xf32, #tpu.memory_space<vmem>>, vector<16x128xf32>
    %27 = arith.maximumf %25, %26 : vector<16x128xf32>
    %c0_22 = arith.constant 0 : index
    %c0_23 = arith.constant 0 : index
    %c0_24 = arith.constant 0 : index
    %28 = vector.load %arg14[%c0_22, %c0_23, %c0_24] : memref<1x16x128xf32, #tpu.memory_space<vmem>>, vector<1x16x128xf32>
    %29 = vector.shape_cast %28 : vector<1x16x128xf32> to vector<16x128xf32>
    %30 = vector.shape_cast %27 : vector<16x128xf32> to vector<1x16x128xf32>
    tpu.vector_store %arg14[%c0_22, %c0_23, %c0_24], %30 {strides = array<i32>} : memref<1x16x128xf32, #tpu.memory_space<vmem>>, vector<1x16x128xf32>,
    %cst_25 = arith.constant 0.000000e+00 : bf16
    %31 = vector.broadcast %cst_25 : bf16 to vector<1x128xbf16>
    %c0_26 = arith.constant 0 : index
    %c0_27 = arith.constant 0 : index
    %32 = vector.load %arg18[%c0_26, %c0_27] : memref<24x128xbf16, #tpu.memory_space<vmem>>, vector<1x128xbf16>
    tpu.vector_store %arg18[%c0_26, %c0_27], %31 {strides = array<i32>} : memref<24x128xbf16, #tpu.memory_space<vmem>>, vector<1x128xbf16>,
    %33 = arith.truncf %27 : vector<16x128xf32> to vector<16x128xbf16>
    %c1_28 = arith.constant 1 : index
    %c0_29 = arith.constant 0 : index
    %34 = vector.load %arg18[%c1_28, %c0_29] : memref<24x128xbf16, #tpu.memory_space<vmem>>, vector<16x128xbf16>
    tpu.vector_store %arg18[%c1_28, %c0_29], %33 {strides = array<i32>} : memref<24x128xbf16, #tpu.memory_space<vmem>>, vector<16x128xbf16>,
    %cst_30 = arith.constant 0.000000e+00 : bf16
    %35 = vector.broadcast %cst_30 : bf16 to vector<7x128xbf16>
    %c17 = arith.constant 17 : index
    %c0_31 = arith.constant 0 : index
    %36 = vector.load %arg18[%c17, %c0_31] : memref<24x128xbf16, #tpu.memory_space<vmem>>, vector<7x128xbf16>
    tpu.vector_store %arg18[%c17, %c0_31], %35 {strides = array<i32>} : memref<24x128xbf16, #tpu.memory_space<vmem>>, vector<7x128xbf16>,
    %c0_32 = arith.constant 0 : index
    %c0_33 = arith.constant 0 : index
    %37 = vector.load %arg18[%c0_32, %c0_33] : memref<24x128xbf16, #tpu.memory_space<vmem>>, vector<24x128xbf16>
    %c0_34 = arith.constant 0 : index
    %c0_35 = arith.constant 0 : index
    %c0_36 = arith.constant 0 : index
    %38 = vector.load %arg5[%c0_34, %c0_35, %c0_36] : memref<3x128x128xbf16, #tpu.memory_space<vmem>>, vector<1x128x128xbf16>
    %39 = vector.shape_cast %38 : vector<1x128x128xbf16> to vector<128x128xbf16>
    %cst_37 = arith.constant dense<0.000000e+00> : vector<24x128xf32>
    %40 = tpu.matmul %37, %39, %cst_37 {dimension_numbers = #tpu.dot_dimension_numbers<[1], [0], [0], [1], [0, 0, 1, 1], [], []>} : vector<24x128xbf16>, vector<128x128xbf16>, vector<24x128xf32> -> vector<24x128xf32>
    %c1_38 = arith.constant 1 : index
    %c0_39 = arith.constant 0 : index
    %c0_40 = arith.constant 0 : index
    %41 = vector.load %arg5[%c1_38, %c0_39, %c0_40] : memref<3x128x128xbf16, #tpu.memory_space<vmem>>, vector<1x128x128xbf16>
    %42 = vector.shape_cast %41 : vector<1x128x128xbf16> to vector<128x128xbf16>
    %cst_41 = arith.constant dense<0.000000e+00> : vector<24x128xf32>
    %43 = tpu.matmul %37, %42, %cst_41 {dimension_numbers = #tpu.dot_dimension_numbers<[1], [0], [0], [1], [0, 0, 1, 1], [], []>} : vector<24x128xbf16>, vector<128x128xbf16>, vector<24x128xf32> -> vector<24x128xf32>
    %c2_42 = arith.constant 2 : index
    %c0_43 = arith.constant 0 : index
    %c0_44 = arith.constant 0 : index
    %44 = vector.load %arg5[%c2_42, %c0_43, %c0_44] : memref<3x128x128xbf16, #tpu.memory_space<vmem>>, vector<1x128x128xbf16>
    %45 = vector.shape_cast %44 : vector<1x128x128xbf16> to vector<128x128xbf16>
    %cst_45 = arith.constant dense<0.000000e+00> : vector<24x128xf32>
    %46 = tpu.matmul %37, %45, %cst_45 {dimension_numbers = #tpu.dot_dimension_numbers<[1], [0], [0], [1], [0, 0, 1, 1], [], []>} : vector<24x128xbf16>, vector<128x128xbf16>, vector<24x128xf32> -> vector<24x128xf32>
    %47 = vector.extract_strided_slice %40 {offsets = [0, 0], sizes = [16, 128], strides = [1, 1]} : vector<24x128xf32> to vector<16x128xf32>
    %48 = vector.extract_strided_slice %43 {offsets = [1, 0], sizes = [16, 128], strides = [1, 1]} : vector<24x128xf32> to vector<16x128xf32>
    %49 = arith.addf %47, %48 : vector<16x128xf32>
    %50 = vector.extract_strided_slice %46 {offsets = [2, 0], sizes = [16, 128], strides = [1, 1]} : vector<24x128xf32> to vector<16x128xf32>
    %51 = arith.addf %49, %50 : vector<16x128xf32>
    %c0_46 = arith.constant 0 : index
    %c0_47 = arith.constant 0 : index
    %52 = vector.load %arg6[%c0_46, %c0_47] : memref<1x128xf32, #tpu.memory_space<vmem>>, vector<1x128xf32>
    %53 = vector.broadcast %52 : vector<1x128xf32> to vector<16x128xf32>
    %54 = arith.mulf %51, %53 : vector<16x128xf32>
    %c0_48 = arith.constant 0 : index
    %c0_49 = arith.constant 0 : index
    %55 = vector.load %arg7[%c0_48, %c0_49] : memref<1x128xf32, #tpu.memory_space<vmem>>, vector<1x128xf32>
    %56 = vector.broadcast %55 : vector<1x128xf32> to vector<16x128xf32>
    %57 = arith.addf %54, %56 : vector<16x128xf32>
    %cst_50 = arith.constant 0.000000e+00 : f32
    %58 = vector.broadcast %cst_50 : f32 to vector<16x128xf32>
    %59 = arith.maximumf %57, %58 : vector<16x128xf32>
    %c0_51 = arith.constant 0 : index
    %c0_52 = arith.constant 0 : index
    %60 = vector.load %arg21[%c0_51, %c0_52] : memref<32x128xf32, #tpu.memory_space<vmem>>, vector<16x128xf32>
    tpu.vector_store %arg21[%c0_51, %c0_52], %59 {strides = array<i32>} : memref<32x128xf32, #tpu.memory_space<vmem>>, vector<16x128xf32>,
    %c0_53 = arith.constant 0 : index
    %c0_54 = arith.constant 0 : index
    %61 = tpu.strided_load %arg21[%c0_53, %c0_54] {strides = array<i32: 2, 1>} : memref<32x128xf32, #tpu.memory_space<vmem>>, vector<8x128xf32>
    %c1_55 = arith.constant 1 : index
    %c0_56 = arith.constant 0 : index
    %62 = tpu.strided_load %arg21[%c1_55, %c0_56] {strides = array<i32: 2, 1>} : memref<32x128xf32, #tpu.memory_space<vmem>>, vector<8x128xf32>
    %63 = arith.maximumf %61, %62 : vector<8x128xf32>
    %c0_57 = arith.constant 0 : index
    %c0_58 = arith.constant 0 : index
    %c0_59 = arith.constant 0 : index
    %64 = vector.load %arg15[%c0_57, %c0_58, %c0_59] : memref<1x8x128xf32, #tpu.memory_space<vmem>>, vector<1x8x128xf32>
    %65 = vector.shape_cast %64 : vector<1x8x128xf32> to vector<8x128xf32>
    %66 = vector.shape_cast %63 : vector<8x128xf32> to vector<1x8x128xf32>
    tpu.vector_store %arg15[%c0_57, %c0_58, %c0_59], %66 {strides = array<i32>} : memref<1x8x128xf32, #tpu.memory_space<vmem>>, vector<1x8x128xf32>,
    %cst_60 = arith.constant 0.000000e+00 : bf16
    %67 = vector.broadcast %cst_60 : bf16 to vector<1x128xbf16>
    %c0_61 = arith.constant 0 : index
    %c0_62 = arith.constant 0 : index
    %68 = vector.load %arg19[%c0_61, %c0_62] : memref<16x128xbf16, #tpu.memory_space<vmem>>, vector<1x128xbf16>
    tpu.vector_store %arg19[%c0_61, %c0_62], %67 {strides = array<i32>} : memref<16x128xbf16, #tpu.memory_space<vmem>>, vector<1x128xbf16>,
    %69 = arith.truncf %63 : vector<8x128xf32> to vector<8x128xbf16>
    %c1_63 = arith.constant 1 : index
    %c0_64 = arith.constant 0 : index
    %70 = vector.load %arg19[%c1_63, %c0_64] : memref<16x128xbf16, #tpu.memory_space<vmem>>, vector<8x128xbf16>
    tpu.vector_store %arg19[%c1_63, %c0_64], %69 {strides = array<i32>} : memref<16x128xbf16, #tpu.memory_space<vmem>>, vector<8x128xbf16>,
    %cst_65 = arith.constant 0.000000e+00 : bf16
    %71 = vector.broadcast %cst_65 : bf16 to vector<7x128xbf16>
    %c9 = arith.constant 9 : index
    %c0_66 = arith.constant 0 : index
    %72 = vector.load %arg19[%c9, %c0_66] : memref<16x128xbf16, #tpu.memory_space<vmem>>, vector<7x128xbf16>
    tpu.vector_store %arg19[%c9, %c0_66], %71 {strides = array<i32>} : memref<16x128xbf16, #tpu.memory_space<vmem>>, vector<7x128xbf16>,
    %c0_67 = arith.constant 0 : index
    %c0_68 = arith.constant 0 : index
    %73 = vector.load %arg19[%c0_67, %c0_68] : memref<16x128xbf16, #tpu.memory_space<vmem>>, vector<16x128xbf16>
    %c0_69 = arith.constant 0 : index
    %c0_70 = arith.constant 0 : index
    %c0_71 = arith.constant 0 : index
    %74 = vector.load %arg8[%c0_69, %c0_70, %c0_71] : memref<3x128x128xbf16, #tpu.memory_space<vmem>>, vector<1x128x128xbf16>
    %75 = vector.shape_cast %74 : vector<1x128x128xbf16> to vector<128x128xbf16>
    %cst_72 = arith.constant dense<0.000000e+00> : vector<16x128xf32>
    %76 = tpu.matmul %73, %75, %cst_72 {dimension_numbers = #tpu.dot_dimension_numbers<[1], [0], [0], [1], [0, 0, 1, 1], [], []>} : vector<16x128xbf16>, vector<128x128xbf16>, vector<16x128xf32> -> vector<16x128xf32>
    %c1_73 = arith.constant 1 : index
    %c0_74 = arith.constant 0 : index
    %c0_75 = arith.constant 0 : index
    %77 = vector.load %arg8[%c1_73, %c0_74, %c0_75] : memref<3x128x128xbf16, #tpu.memory_space<vmem>>, vector<1x128x128xbf16>
    %78 = vector.shape_cast %77 : vector<1x128x128xbf16> to vector<128x128xbf16>
    %cst_76 = arith.constant dense<0.000000e+00> : vector<16x128xf32>
    %79 = tpu.matmul %73, %78, %cst_76 {dimension_numbers = #tpu.dot_dimension_numbers<[1], [0], [0], [1], [0, 0, 1, 1], [], []>} : vector<16x128xbf16>, vector<128x128xbf16>, vector<16x128xf32> -> vector<16x128xf32>
    %c2_77 = arith.constant 2 : index
    %c0_78 = arith.constant 0 : index
    %c0_79 = arith.constant 0 : index
    %80 = vector.load %arg8[%c2_77, %c0_78, %c0_79] : memref<3x128x128xbf16, #tpu.memory_space<vmem>>, vector<1x128x128xbf16>
    %81 = vector.shape_cast %80 : vector<1x128x128xbf16> to vector<128x128xbf16>
    %cst_80 = arith.constant dense<0.000000e+00> : vector<16x128xf32>
    %82 = tpu.matmul %73, %81, %cst_80 {dimension_numbers = #tpu.dot_dimension_numbers<[1], [0], [0], [1], [0, 0, 1, 1], [], []>} : vector<16x128xbf16>, vector<128x128xbf16>, vector<16x128xf32> -> vector<16x128xf32>
    %83 = vector.extract_strided_slice %76 {offsets = [0, 0], sizes = [8, 128], strides = [1, 1]} : vector<16x128xf32> to vector<8x128xf32>
    %84 = vector.extract_strided_slice %79 {offsets = [1, 0], sizes = [8, 128], strides = [1, 1]} : vector<16x128xf32> to vector<8x128xf32>
    %85 = arith.addf %83, %84 : vector<8x128xf32>
    %86 = vector.extract_strided_slice %82 {offsets = [2, 0], sizes = [8, 128], strides = [1, 1]} : vector<16x128xf32> to vector<8x128xf32>
    %87 = arith.addf %85, %86 : vector<8x128xf32>
    %c0_81 = arith.constant 0 : index
    %c0_82 = arith.constant 0 : index
    %88 = vector.load %arg9[%c0_81, %c0_82] : memref<1x128xf32, #tpu.memory_space<vmem>>, vector<1x128xf32>
    %89 = vector.broadcast %88 : vector<1x128xf32> to vector<8x128xf32>
    %90 = arith.mulf %87, %89 : vector<8x128xf32>
    %c0_83 = arith.constant 0 : index
    %c0_84 = arith.constant 0 : index
    %91 = vector.load %arg10[%c0_83, %c0_84] : memref<1x128xf32, #tpu.memory_space<vmem>>, vector<1x128xf32>
    %92 = vector.broadcast %91 : vector<1x128xf32> to vector<8x128xf32>
    %93 = arith.addf %90, %92 : vector<8x128xf32>
    %cst_85 = arith.constant 0.000000e+00 : f32
    %94 = vector.broadcast %cst_85 : f32 to vector<8x128xf32>
    %95 = arith.maximumf %93, %94 : vector<8x128xf32>
    %c0_86 = arith.constant 0 : index
    %c0_87 = arith.constant 0 : index
    %96 = vector.load %arg21[%c0_86, %c0_87] : memref<32x128xf32, #tpu.memory_space<vmem>>, vector<8x128xf32>
    tpu.vector_store %arg21[%c0_86, %c0_87], %95 {strides = array<i32>} : memref<32x128xf32, #tpu.memory_space<vmem>>, vector<8x128xf32>,
    %c0_88 = arith.constant 0 : index
    %c0_89 = arith.constant 0 : index
    %97 = tpu.strided_load %arg21[%c0_88, %c0_89] {strides = array<i32: 2, 1>} : memref<32x128xf32, #tpu.memory_space<vmem>>, vector<4x128xf32>
    %c1_90 = arith.constant 1 : index
    %c0_91 = arith.constant 0 : index
    %98 = tpu.strided_load %arg21[%c1_90, %c0_91] {strides = array<i32: 2, 1>} : memref<32x128xf32, #tpu.memory_space<vmem>>, vector<4x128xf32>
    %99 = arith.maximumf %97, %98 : vector<4x128xf32>
    %c0_92 = arith.constant 0 : index
    %c0_93 = arith.constant 0 : index
    %c0_94 = arith.constant 0 : index
    %100 = vector.load %arg16[%c0_92, %c0_93, %c0_94] : memref<1x4x128xf32, #tpu.memory_space<vmem>>, vector<1x4x128xf32>
    %101 = vector.shape_cast %100 : vector<1x4x128xf32> to vector<4x128xf32>
    %102 = vector.shape_cast %99 : vector<4x128xf32> to vector<1x4x128xf32>
    tpu.vector_store %arg16[%c0_92, %c0_93, %c0_94], %102 {strides = array<i32>} : memref<1x4x128xf32, #tpu.memory_space<vmem>>, vector<1x4x128xf32>,
    %cst_95 = arith.constant 0.000000e+00 : bf16
    %103 = vector.broadcast %cst_95 : bf16 to vector<1x128xbf16>
    %c0_96 = arith.constant 0 : index
    %c0_97 = arith.constant 0 : index
    %104 = vector.load %arg20[%c0_96, %c0_97] : memref<8x128xbf16, #tpu.memory_space<vmem>>, vector<1x128xbf16>
    tpu.vector_store %arg20[%c0_96, %c0_97], %103 {strides = array<i32>} : memref<8x128xbf16, #tpu.memory_space<vmem>>, vector<1x128xbf16>,
    %105 = arith.truncf %99 : vector<4x128xf32> to vector<4x128xbf16>
    %c1_98 = arith.constant 1 : index
    %c0_99 = arith.constant 0 : index
    %106 = vector.load %arg20[%c1_98, %c0_99] : memref<8x128xbf16, #tpu.memory_space<vmem>>, vector<4x128xbf16>
    tpu.vector_store %arg20[%c1_98, %c0_99], %105 {strides = array<i32>} : memref<8x128xbf16, #tpu.memory_space<vmem>>, vector<4x128xbf16>,
    %cst_100 = arith.constant 0.000000e+00 : bf16
    %107 = vector.broadcast %cst_100 : bf16 to vector<3x128xbf16>
    %c5 = arith.constant 5 : index
    %c0_101 = arith.constant 0 : index
    %108 = vector.load %arg20[%c5, %c0_101] : memref<8x128xbf16, #tpu.memory_space<vmem>>, vector<3x128xbf16>
    tpu.vector_store %arg20[%c5, %c0_101], %107 {strides = array<i32>} : memref<8x128xbf16, #tpu.memory_space<vmem>>, vector<3x128xbf16>,
    %c0_102 = arith.constant 0 : index
    %c0_103 = arith.constant 0 : index
    %109 = vector.load %arg20[%c0_102, %c0_103] : memref<8x128xbf16, #tpu.memory_space<vmem>>, vector<8x128xbf16>
    %c0_104 = arith.constant 0 : index
    %c0_105 = arith.constant 0 : index
    %c0_106 = arith.constant 0 : index
    %110 = vector.load %arg11[%c0_104, %c0_105, %c0_106] : memref<3x128x128xbf16, #tpu.memory_space<vmem>>, vector<1x128x128xbf16>
    %111 = vector.shape_cast %110 : vector<1x128x128xbf16> to vector<128x128xbf16>
    %cst_107 = arith.constant dense<0.000000e+00> : vector<8x128xf32>
    %112 = tpu.matmul %109, %111, %cst_107 {dimension_numbers = #tpu.dot_dimension_numbers<[1], [0], [0], [1], [0, 0, 1, 1], [], []>} : vector<8x128xbf16>, vector<128x128xbf16>, vector<8x128xf32> -> vector<8x128xf32>
    %c1_108 = arith.constant 1 : index
    %c0_109 = arith.constant 0 : index
    %c0_110 = arith.constant 0 : index
    %113 = vector.load %arg11[%c1_108, %c0_109, %c0_110] : memref<3x128x128xbf16, #tpu.memory_space<vmem>>, vector<1x128x128xbf16>
    %114 = vector.shape_cast %113 : vector<1x128x128xbf16> to vector<128x128xbf16>
    %cst_111 = arith.constant dense<0.000000e+00> : vector<8x128xf32>
    %115 = tpu.matmul %109, %114, %cst_111 {dimension_numbers = #tpu.dot_dimension_numbers<[1], [0], [0], [1], [0, 0, 1, 1], [], []>} : vector<8x128xbf16>, vector<128x128xbf16>, vector<8x128xf32> -> vector<8x128xf32>
    %c2_112 = arith.constant 2 : index
    %c0_113 = arith.constant 0 : index
    %c0_114 = arith.constant 0 : index
    %116 = vector.load %arg11[%c2_112, %c0_113, %c0_114] : memref<3x128x128xbf16, #tpu.memory_space<vmem>>, vector<1x128x128xbf16>
    %117 = vector.shape_cast %116 : vector<1x128x128xbf16> to vector<128x128xbf16>
    %cst_115 = arith.constant dense<0.000000e+00> : vector<8x128xf32>
    %118 = tpu.matmul %109, %117, %cst_115 {dimension_numbers = #tpu.dot_dimension_numbers<[1], [0], [0], [1], [0, 0, 1, 1], [], []>} : vector<8x128xbf16>, vector<128x128xbf16>, vector<8x128xf32> -> vector<8x128xf32>
    %119 = vector.extract_strided_slice %112 {offsets = [0, 0], sizes = [4, 128], strides = [1, 1]} : vector<8x128xf32> to vector<4x128xf32>
    %120 = vector.extract_strided_slice %115 {offsets = [1, 0], sizes = [4, 128], strides = [1, 1]} : vector<8x128xf32> to vector<4x128xf32>
    %121 = arith.addf %119, %120 : vector<4x128xf32>
    %122 = vector.extract_strided_slice %118 {offsets = [2, 0], sizes = [4, 128], strides = [1, 1]} : vector<8x128xf32> to vector<4x128xf32>
    %123 = arith.addf %121, %122 : vector<4x128xf32>
    %c0_116 = arith.constant 0 : index
    %c0_117 = arith.constant 0 : index
    %124 = vector.load %arg12[%c0_116, %c0_117] : memref<1x128xf32, #tpu.memory_space<vmem>>, vector<1x128xf32>
    %125 = vector.broadcast %124 : vector<1x128xf32> to vector<4x128xf32>
    %126 = arith.mulf %123, %125 : vector<4x128xf32>
    %c0_118 = arith.constant 0 : index
    %c0_119 = arith.constant 0 : index
    %127 = vector.load %arg13[%c0_118, %c0_119] : memref<1x128xf32, #tpu.memory_space<vmem>>, vector<1x128xf32>
    %128 = vector.broadcast %127 : vector<1x128xf32> to vector<4x128xf32>
    %129 = arith.addf %126, %128 : vector<4x128xf32>
    %cst_120 = arith.constant 0.000000e+00 : f32
    %130 = vector.broadcast %cst_120 : f32 to vector<4x128xf32>
    %131 = arith.maximumf %129, %130 : vector<4x128xf32>
    %c0_121 = arith.constant 0 : index
    %c0_122 = arith.constant 0 : index
    %132 = vector.load %arg21[%c0_121, %c0_122] : memref<32x128xf32, #tpu.memory_space<vmem>>, vector<4x128xf32>
    tpu.vector_store %arg21[%c0_121, %c0_122], %131 {strides = array<i32>} : memref<32x128xf32, #tpu.memory_space<vmem>>, vector<4x128xf32>,
    %c0_123 = arith.constant 0 : index
    %c0_124 = arith.constant 0 : index
    %133 = tpu.strided_load %arg21[%c0_123, %c0_124] {strides = array<i32: 2, 1>} : memref<32x128xf32, #tpu.memory_space<vmem>>, vector<2x128xf32>
    %c1_125 = arith.constant 1 : index
    %c0_126 = arith.constant 0 : index
    %134 = tpu.strided_load %arg21[%c1_125, %c0_126] {strides = array<i32: 2, 1>} : memref<32x128xf32, #tpu.memory_space<vmem>>, vector<2x128xf32>
    %135 = arith.maximumf %133, %134 : vector<2x128xf32>
    %c0_127 = arith.constant 0 : index
    %c0_128 = arith.constant 0 : index
    %c0_129 = arith.constant 0 : index
    %136 = vector.load %arg17[%c0_127, %c0_128, %c0_129] : memref<1x2x128xf32, #tpu.memory_space<vmem>>, vector<1x2x128xf32>
    %137 = vector.shape_cast %136 : vector<1x2x128xf32> to vector<2x128xf32>
    %138 = vector.shape_cast %135 : vector<2x128xf32> to vector<1x2x128xf32>
    tpu.vector_store %arg17[%c0_127, %c0_128, %c0_129], %138 {strides = array<i32>} : memref<1x2x128xf32, #tpu.memory_space<vmem>>, vector<1x2x128xf32>,
    return
  }
  func.func @transform_0(%arg0: i32) -> (i32, i32, i32) {
    %c0_i32 = arith.constant 0 : i32
    %c0_i32_0 = arith.constant 0 : i32
    %c0_i32_1 = arith.constant 0 : i32
    return %arg0, %c0_i32, %c0_i32_0 : i32, i32, i32
  }
  func.func @transform_1(%arg0: i32) -> (i32, i32, i32) {
    %c0_i32 = arith.constant 0 : i32
    %c0_i32_0 = arith.constant 0 : i32
    %c0_i32_1 = arith.constant 0 : i32
    %c0_i32_2 = arith.constant 0 : i32
    return %c0_i32, %c0_i32_0, %c0_i32_1 : i32, i32, i32
  }
  func.func @transform_2(%arg0: i32) -> (i32, i32) {
    %c0_i32 = arith.constant 0 : i32
    %c0_i32_0 = arith.constant 0 : i32
    %c0_i32_1 = arith.constant 0 : i32
    return %c0_i32, %c0_i32_0 : i32, i32
  }
  func.func @transform_3(%arg0: i32) -> (i32, i32) {
    %c0_i32 = arith.constant 0 : i32
    %c0_i32_0 = arith.constant 0 : i32
    %c0_i32_1 = arith.constant 0 : i32
    return %c0_i32, %c0_i32_0 : i32, i32
  }
  func.func @transform_4(%arg0: i32) -> (i32, i32, i32) {
    %c0_i32 = arith.constant 0 : i32
    %c0_i32_0 = arith.constant 0 : i32
    %c0_i32_1 = arith.constant 0 : i32
    %c0_i32_2 = arith.constant 0 : i32
    return %c0_i32, %c0_i32_0, %c0_i32_1 : i32, i32, i32
  }
  func.func @transform_5(%arg0: i32) -> (i32, i32) {
    %c0_i32 = arith.constant 0 : i32
    %c0_i32_0 = arith.constant 0 : i32
    %c0_i32_1 = arith.constant 0 : i32
    return %c0_i32, %c0_i32_0 : i32, i32
  }
  func.func @transform_6(%arg0: i32) -> (i32, i32) {
    %c0_i32 = arith.constant 0 : i32
    %c0_i32_0 = arith.constant 0 : i32
    %c0_i32_1 = arith.constant 0 : i32
    return %c0_i32, %c0_i32_0 : i32, i32
  }
  func.func @transform_7(%arg0: i32) -> (i32, i32, i32) {
    %c0_i32 = arith.constant 0 : i32
    %c0_i32_0 = arith.constant 0 : i32
    %c0_i32_1 = arith.constant 0 : i32
    %c0_i32_2 = arith.constant 0 : i32
    return %c0_i32, %c0_i32_0, %c0_i32_1 : i32, i32, i32
  }
  func.func @transform_8(%arg0: i32) -> (i32, i32) {
    %c0_i32 = arith.constant 0 : i32
    %c0_i32_0 = arith.constant 0 : i32
    %c0_i32_1 = arith.constant 0 : i32
    return %c0_i32, %c0_i32_0 : i32, i32
  }
  func.func @transform_9(%arg0: i32) -> (i32, i32) {
    %c0_i32 = arith.constant 0 : i32
    %c0_i32_0 = arith.constant 0 : i32
    %c0_i32_1 = arith.constant 0 : i32
    return %c0_i32, %c0_i32_0 : i32, i32
  }
  func.func @transform_10(%arg0: i32) -> (i32, i32, i32) {
    %c0_i32 = arith.constant 0 : i32
    %c0_i32_0 = arith.constant 0 : i32
    %c0_i32_1 = arith.constant 0 : i32
    %c0_i32_2 = arith.constant 0 : i32
    return %c0_i32, %c0_i32_0, %c0_i32_1 : i32, i32, i32
  }
  func.func @transform_11(%arg0: i32) -> (i32, i32) {
    %c0_i32 = arith.constant 0 : i32
    %c0_i32_0 = arith.constant 0 : i32
    %c0_i32_1 = arith.constant 0 : i32
    return %c0_i32, %c0_i32_0 : i32, i32
  }
  func.func @transform_12(%arg0: i32) -> (i32, i32) {
    %c0_i32 = arith.constant 0 : i32
    %c0_i32_0 = arith.constant 0 : i32
    %c0_i32_1 = arith.constant 0 : i32
    return %c0_i32, %c0_i32_0 : i32, i32
  }
  func.func @transform_13(%arg0: i32) -> (i32, i32, i32) {
    %c0_i32 = arith.constant 0 : i32
    %c0_i32_0 = arith.constant 0 : i32
    %c0_i32_1 = arith.constant 0 : i32
    return %arg0, %c0_i32, %c0_i32_0 : i32, i32, i32
  }
  func.func @transform_14(%arg0: i32) -> (i32, i32, i32) {
    %c0_i32 = arith.constant 0 : i32
    %c0_i32_0 = arith.constant 0 : i32
    %c0_i32_1 = arith.constant 0 : i32
    return %arg0, %c0_i32, %c0_i32_0 : i32, i32, i32
  }
  func.func @transform_15(%arg0: i32) -> (i32, i32, i32) {
    %c0_i32 = arith.constant 0 : i32
    %c0_i32_0 = arith.constant 0 : i32
    %c0_i32_1 = arith.constant 0 : i32
    return %arg0, %c0_i32, %c0_i32_0 : i32, i32, i32
  }
  func.func @transform_16(%arg0: i32) -> (i32, i32, i32) {
    %c0_i32 = arith.constant 0 : i32
    %c0_i32_0 = arith.constant 0 : i32
    %c0_i32_1 = arith.constant 0 : i32
    return %arg0, %c0_i32, %c0_i32_0 : i32, i32, i32
  }
}

</mosaic_0001>

<bundles_post_ra>
// kernel: convnet_forward.1
= control target key start
LH: loop header
LB: loop body
LE: loop exit
PB: predicated region body
PF: predicated region fallthrough
CT: control target
= control target key end

     0   :  { %s3674_s0 = inlined_call_operand.vmem [shape: bf16[2,40,128], index: 0, kind: input, shape index: {}]   ;;  %s3675_s1 = inlined_call_operand.hbm [shape: bf16[3,128,128], index: 1, kind: input, shape index: {}]   ;;  %s3676_s2 = inlined_call_operand.vmem [shape: f32[1,128], index: 2, kind: input, shape index: {}]   ;;  %s3677_s3 = inlined_call_operand.vmem [shape: f32[1,128], index: 3, kind: input, shape index: {}]   ;;  %s3678_s4 = inlined_call_operand.hbm [shape: bf16[3,128,128], index: 4, kind: input, shape index: {}]   ;;  %s3679_s5 = inlined_call_operand.vmem [shape: f32[1,128], index: 5, kind: input, shape index: {}]   ;;  %s3680_s6 = inlined_call_operand.vmem [shape: f32[1,128], index: 6, kind: input, shape index: {}]   ;;  %s3681_s7 = inlined_call_operand.hbm [shape: bf16[3,128,128], index: 7, kind: input, shape index: {}]   ;;  %s3682_s8 = inlined_call_operand.vmem [shape: f32[1,128], index: 8, kind: input, shape index: {}]   ;;  %s3683_s9 = inlined_call_operand.vmem [shape: f32[1,128], index: 9, kind: input, shape index: {}]   ;;  %s3684_s10 = inlined_call_operand.hbm [shape: bf16[3,128,128], index: 10, kind: input, shape index: {}]   ;;  %s3685_s11 = inlined_call_operand.vmem [shape: f32[1,128], index: 11, kind: input, shape index: {}]   ;;  %s3686_s12 = inlined_call_operand.vmem [shape: f32[1,128], index: 12, kind: input, shape index: {}]   ;;  %s3687_s13 = inlined_call_operand.vmem [shape: f32[2,16,128], index: 13, kind: output, shape index: {0}]   ;;  %s3688_s14 = inlined_call_operand.vmem [shape: f32[2,8,128], index: 14, kind: output, shape index: {1}]   ;;  %s3689_s15 = inlined_call_operand.vmem [shape: f32[2,4,128], index: 15, kind: output, shape index: {2}]   ;;  %s3690_s16 = inlined_call_operand.vmem [shape: f32[2,2,128], index: 16, kind: output, shape index: {3}]  }
   0x1   :  { %3691 = sst [smem:[#allocation16_spill]] %s3674_s0 }
   0x2   :  { %22 = vsyncpa [#allocation7], 0 }
   0x3   :  { %23 = vsyncpa [#allocation9], 0 }
   0x4   :  { %24 = vsyncpa [#allocation12], 0  ;;  %s3370_s21 = smov 0  }
   0x5 LB: > { %s3376_s22 = sadd.s32 4294967295, %s3275_s21   ;;  %p2478_p0 = scmp.ge.s32.totalorder %s3275_s21, 1  ;;  %s3275_s21 = sphi %s3370_s21, %s30_s21  }
   0x6   : > { %p417_p1 = scmp.lt.s32.totalorder %s3275_s21, 3  ;;  %p3027_p2 = scmp.eq.s32.totalorder %s3376_s22, 0 }
   0x7   : > { %s3277_s24 = smov [#allocation8]   ;;  %s3278_s26 = smov [#allocation6]  }
   0x8   : > { %p3381_p3 = pnand %p2478_p0, %p417_p1  ;;  %s448_s25 = sshll.u32 %s3277_s24, 4  ;;  %s449_s25 = int_to_ptr.vmem [resolvable:$true] %s448_s25 }
   0x9   : > { %s429_s27 = sshll.u32 %s3278_s26, 4  ;;  %s3279_s29 = smov [#allocation10]   ;;  %s3387_s27 = int_to_ptr.vmem [resolvable:$true] %s429_s27 }
   0xa   : > { %p3014_p4 = pneg %p3381_p3  ;;  %s467_s30 = sshll.u32 %s3279_s29, 4  ;;  %s3395_s30 = int_to_ptr.vmem [resolvable:$true] %s467_s30 }
   0xb   : > { %s3280_s0 = smov [#allocation11]   ;;  %s3164_s18 = scalar_lea.vmem %s449_s25, 3072 }
   0xc   : > { %p3391_p5 = pnand %p3027_p2, %p3014_p4  ;;  %s3397_s17 = sshll.u32 %s3280_s0, 4  ;;  %s487_s17 = int_to_ptr.vmem [resolvable:$true] %s3397_s17 }
   0xd   : > { %p3165_p7 = scmp.ne.s32.totalorder %s449_s25, %s3164_s18  ;;  %p3172_p10 = scmp.lt.s32.totalorder %s449_s25, %s449_s25 }
   0xe   : > { %p3155_p6 = pneg %p3391_p5  ;;  %p3173_p11 = scmp.lt.s32.totalorder %s3164_s18, %s3164_s18 }
  0x10   : > { %p3167_p8 = pnand %p3165_p7, %p3155_p6  ;;  %p3174_p12 = por %p3173_p11, %p3172_p10 }
  0x12   : > { %p3168_p9 = pneg %p3167_p8 }
  0x14   : > { %p3175_p13 = pnand %p3174_p12, %p3168_p9 }
  0x16   : > { %3178 = shalt.err (!%p3175_p13)
}
  0x17   : > { %s3281_s19 = smov 64   ;;  %s3282_s20 = smov 4  }
  0x18   : > { %3020 = dma.hbm_to_vmem [thread:$0]  (!%p3391_p5), %s3678_s4, 3072, %s449_s25, [#allocation9], %s3281_s19, %s3281_s19, %s3282_s20  }
  0x19   : > { %s3190_s29 = scalar_lea.vmem %s3387_s27, 3072  ;;  %p3198_p7 = scmp.lt.s32.totalorder %s3387_s27, %s3387_s27 }
  0x1a   : > { %p3191_p0 = scmp.ne.s32.totalorder %s3387_s27, %s3190_s29  ;;  %p3199_p8 = scmp.lt.s32.totalorder %s3190_s29, %s3190_s29 }
  0x1c   : > { %p3193_p1 = pnand %p3191_p0, %p3155_p6  ;;  %p3200_p9 = por %p3199_p8, %p3198_p7 }
  0x1e   : > { %p3194_p4 = pneg %p3193_p1 }
  0x20   : > { %p3201_p10 = pnand %p3200_p9, %p3194_p4 }
  0x22   : > { %3204 = shalt.err (!%p3201_p10)
}
  0x23   : > { %3017 = dma.hbm_to_vmem [thread:$0]  (!%p3391_p5), %s3675_s1, 3072, %s3387_s27, [#allocation7], %s3281_s19, %s3281_s19, %s3282_s20  }
  0x24   : > { %s3216_s18 = scalar_lea.vmem %s3395_s30, 3072  ;;  %p3224_p0 = scmp.lt.s32.totalorder %s3395_s30, %s3395_s30 }
  0x25   : > { %p3217_p11 = scmp.ne.s32.totalorder %s3395_s30, %s3216_s18  ;;  %p3225_p1 = scmp.lt.s32.totalorder %s3216_s18, %s3216_s18 }
  0x27   : > { %p3219_p12 = pnand %p3217_p11, %p3155_p6  ;;  %p3226_p4 = por %p3225_p1, %p3224_p0 }
  0x29   : > { %p3220_p13 = pneg %p3219_p12 }
  0x2b   : > { %p3227_p7 = pnand %p3226_p4, %p3220_p13 }
  0x2d   : > { %3230 = shalt.err (!%p3227_p7)
}
  0x2e   : > { %3023 = dma.hbm_to_vmem [thread:$0]  (!%p3391_p5), %s3681_s7, 3072, %s3395_s30, [#allocation9], %s3281_s19, %s3281_s19, %s3282_s20  }
  0x2f   : > { %s3242_s26 = scalar_lea.vmem %s487_s17, 3072  ;;  %p3250_p11 = scmp.lt.s32.totalorder %s487_s17, %s487_s17 }
  0x30   : > { %p3243_p8 = scmp.ne.s32.totalorder %s487_s17, %s3242_s26  ;;  %p3251_p12 = scmp.lt.s32.totalorder %s3242_s26, %s3242_s26 }
  0x32   : > { %p3245_p9 = pnand %p3243_p8, %p3155_p6  ;;  %p3252_p13 = por %p3251_p12, %p3250_p11 }
  0x34   : > { %p3246_p10 = pneg %p3245_p9 }
  0x36   : > { %p3253_p0 = pnand %p3252_p13, %p3246_p10 }
  0x38   : > { %3256 = shalt.err (!%p3253_p0)
}
  0x39   : > { %3026 = dma.hbm_to_vmem [thread:$0]  (!%p3391_p5), %s3684_s10, 3072, %s487_s17, [#allocation12], %s3281_s19, %s3281_s19, %s3282_s20  }
  0x3a   : > { %516 = sbr.rel (%p3381_p3) target bundleno = 1190 (0x4a6), region = 72 }
  0x3f   : > { %3262 = dma.done.wait (%p3027_p2), [#allocation7], 3072  }
  0x40   : > { %3264 = vsyncadd (%p3027_p2), [#allocation7], 4294964224 }
  0x41   : > { %3266 = dma.done.wait (%p3027_p2), [#allocation9], 6144  }
  0x42   : > { %3268 = vsyncadd (%p3027_p2), [#allocation9], 4294961152 }
  0x43   : > { %3270 = dma.done.wait (%p3027_p2), [#allocation12], 3072  }
  0x44   : > { %3272 = vsyncadd (%p3027_p2), [#allocation12], 4294964224  ;;  %v3283_v0 = vmov 0.0   ;;  %vm3284_vm0 = vmmov 0   ;;  %v3051_v1 = vld [vmem:[#allocation6 + $0x38] sm:$0xff]   ;;  %v3053_v3 = vld [vmem:[#allocation6 + $0x30] sm:$0xff]  }
  0x45   : > { %2733 = vmatprep.subr.bf16.mxu0 %v3283_v0  ;;  %2761 = vmatprep.subr.bf16.mxu1 %v3283_v0  ;;  %v3052_v2 = vld [vmem:[#allocation6 + $0x78] sm:$0xff]   ;;  %v3054_v4 = vld [vmem:[#allocation6 + $0x70] sm:$0xff]   ;;  %p590_p2 = scmp.lt.s32.totalorder %s3376_s22, 1  ;;  %v3055_v5 = vld [vmem:[#allocation6 + $0x28] sm:$0xff]   ;;  %s3694_s17 = sld [smem:[#allocation16_spill]]  ;;  %vm1082_vm1 = vcmask 1040384  }
  0x46   : > { %2749 = vmatprep.mubr.msk.bf16.mxu0 %vm3284_vm0, %v3283_v0  ;;  %2777 = vmatprep.mubr.msk.bf16.mxu1 %vm3284_vm0, %v3283_v0  ;;  %v3056_v6 = vld [vmem:[#allocation6 + $0x68] sm:$0xff]   ;;  %v3057_v7 = vld [vmem:[#allocation6 + $0x20] sm:$0xff]   ;;  %v3059_v9 = vld [vmem:[#allocation6 + $0x18] sm:$0xff]   ;;  %vm1083_vm2 = vsmask.f32 256  ;;  %vm1000_vm4 = vcmask 1046528  }
  0x47   : > { %2734 = vmatpush3.bf16.msra.mxu0 %v3051_v1  ;;  %2762 = vmatpush3.bf16.msra.mxu1 %v3052_v2  ;;  %s3700_s22 = smov (!%p590_p2, %s3376_s22), 1  ;;  %v3058_v8 = vld [vmem:[#allocation6 + $0x60] sm:$0xff]   ;;  %v3060_v10 = vld [vmem:[#allocation6 + $0x58] sm:$0xff]   ;;  %v3061_v11 = vld [vmem:[#allocation6 + $0x10] sm:$0xff]   ;;  %vm1023_vm5 = vcmask 1045504   ;;  %vm1116_vm6 = vcmask 1043456  }
  0x48   : > { %2735 = vmatprep.subr.bf16.mxu0 %v3283_v0  ;;  %2763 = vmatprep.subr.bf16.mxu1 %v3283_v0  ;;  %s2997_s23 = smul.u32 20, %s3700_s22  ;;  %v3062_v12 = vld [vmem:[#allocation6 + $0x50] sm:$0xff]   ;;  %v3063_v13 = vld [vmem:[#allocation6 + $0x8] sm:$0xff]   ;;  %v3065_v15 = vld [vmem:[#allocation6] sm:$0xff]   ;;  %s2611_s27 = sshll.u32 %s3700_s22, 4  ;;  %vm1930_vm11 = vcmask 1042432  }
  0x49   : > { %v3064_v14 = vld [vmem:[#allocation6 + $0x48] sm:$0xff]   ;;  %v3066_v16 = vld [vmem:[#allocation6 + $0x40] sm:$0xff]   ;;  %v3068_v18 = vld [vmem:[#allocation6 + $0xb8] sm:$0xff]   ;;  %s599_s0 = scalar_lea.vmem %s3687_s13, %s2611_s27  ;;  %vm1117_vm7 = vsmask.f32 7938  ;;  %vm1936_vm14 = vcmask 1043458  }
  0x4a   : > { %v3069_v19 = vld [vmem:[#allocation6 + $0xb0] sm:$0xff]   ;;  %v3071_v21 = vld [vmem:[#allocation6 + $0xa8] sm:$0xff]   ;;  %v3072_v22 = vld [vmem:[#allocation6 + $0xa0] sm:$0xff]   ;;  %vm1094_vm9 = vsmask.f32 4368 }
  0x4b   : > { %2736 = vmatpush3.bf16.msra.mxu0 %v3053_v3  ;;  %2764 = vmatpush3.bf16.msra.mxu1 %v3054_v4  ;;  %s3491_s19 = scalar_lea.vmem %s3694_s17, %s2997_s23  ;;  %v3074_v24 = vld [vmem:[#allocation6 + $0x98] sm:$0xff]   ;;  %v3075_v25 = vld [vmem:[#allocation6 + $0x90] sm:$0xff]   ;;  %v3076_v26 = vld [vmem:[#allocation6 + $0x88] sm:$0xff]   ;;  %vm1931_vm12 = vsmask.f32 2306 }
  0x4c   : > { %2737 = vmatprep.subr.bf16.mxu0 %v3283_v0  ;;  %2765 = vmatprep.subr.bf16.mxu1 %v3283_v0  ;;  %v3067_v17 = vld [vmem:[%s3491_s19] sm:$0xff]   ;;  %v3070_v20 = vld [vmem:[%s3491_s19 + $0x8] sm:$0xff]   ;;  %v3073_v23 = vld [vmem:[%s3491_s19 + $0x10] ss:$0 sps:$4 sm:$0xff]   ;;  %s2492_s19 = sshll.u32 %s3700_s22, 3 }
  0x4d   : > { %v3077_v27 = vld [vmem:[#allocation6 + $0x80] sm:$0xff]   ;;  %vm3526_vm3 = vmand %vm1082_vm1, %vm1083_vm2  ;;  %v1085_v29 = vld [vmem:[#allocation2] sm:$0x1]  ;;  %s603_s18 = scalar_lea.vmem %s3688_s14, %s2492_s19  ;;  %vm1937_vm15 = vsmask.f32 7946 }
  0x4e   : > { %v1086_v30 = vsel %vm3526_vm3, 0, %v1085_v29  ;;  %v3078_v31 = vld [vmem:[#allocation8 + $0x38] sm:$0xff]   ;;  %v3080_v33 = vld [vmem:[#allocation8 + $0x30] sm:$0xff]   ;;  %v3082_v35 = vld [vmem:[#allocation8 + $0x28] sm:$0xff]  }
  0x4f   : > { %2738 = vmatpush3.bf16.msra.mxu0 %v3055_v5  ;;  %2766 = vmatpush3.bf16.msra.mxu1 %v3056_v6  ;;  %1087 = vst [vmem:[#allocation2] sm:$0x1] %v1086_v30  ;;  %v3079_v32 = vld [vmem:[#allocation8 + $0x78] sm:$0xff]   ;;  %v3081_v34 = vld [vmem:[#allocation8 + $0x70] sm:$0xff]   ;;  %v3083_v36 = vld [vmem:[#allocation8 + $0x68] sm:$0xff]  }
  0x50   : > { %2739 = vmatprep.subr.bf16.mxu0 %v3283_v0  ;;  %2767 = vmatprep.subr.bf16.mxu1 %v3283_v0  ;;  %v3084_v37 = vld [vmem:[#allocation8 + $0x20] sm:$0xff]   ;;  %v3086_v39 = vld [vmem:[#allocation8 + $0x18] sm:$0xff]   ;;  %v3088_v41 = vld [vmem:[#allocation8 + $0x10] sm:$0xff]  }
  0x51   : > { %v3085_v38 = vld [vmem:[#allocation8 + $0x60] sm:$0xff]   ;;  %v3087_v40 = vld [vmem:[#allocation8 + $0x58] sm:$0xff]   ;;  %v3089_v42 = vld [vmem:[#allocation8 + $0x50] sm:$0xff]  }
  0x52   : > { %v3090_v43 = vld [vmem:[#allocation8 + $0x8] sm:$0xff]   ;;  %v3093_v45 = vld [vmem:[#allocation8] sm:$0xff]   ;;  %v3532_v47 = vld [vmem:[#allocation8 + $0xb8] sm:$0xff]  }
  0x53   : > { %2740 = vmatpush3.bf16.msra.mxu0 %v3057_v7  ;;  %2768 = vmatpush3.bf16.msra.mxu1 %v3058_v8  ;;  %v3092_v44 = vld [vmem:[#allocation8 + $0x48] sm:$0xff]   ;;  %v3094_v46 = vld [vmem:[#allocation8 + $0x40] sm:$0xff]   ;;  %vm3554_vm8 = vmand %vm1116_vm6, %vm1117_vm7 }
  0x54   : > { %2741 = vmatprep.subr.bf16.mxu0 %v3283_v0  ;;  %2769 = vmatprep.subr.bf16.mxu1 %v3283_v0  ;;  %vm1095_vm10 = vmor %vm1083_vm2, %vm1094_vm9  ;;  %v3139_v28 = vld [vmem:[#allocation11 + $0x10] sm:$0xff]  }
  0x55   : > { %vm1932_vm13 = vmand %vm1930_vm11, %vm1931_vm12 }
  0x56   : > { %vm1938_vm1 = vmand %vm1936_vm14, %vm1937_vm15 }
  0x57   : > { %2742 = vmatpush3.bf16.msra.mxu0 %v3059_v9  ;;  %2770 = vmatpush3.bf16.msra.mxu1 %v3060_v10 }
  0x58   : > { %2743 = vmatprep.subr.bf16.mxu0 %v3283_v0  ;;  %2771 = vmatprep.subr.bf16.mxu1 %v3283_v0 }
  0x5b   : > { %2744 = vmatpush3.bf16.msra.mxu0 %v3061_v11  ;;  %2772 = vmatpush3.bf16.msra.mxu1 %v3062_v12 }
  0x5c   : > { %2745 = vmatprep.subr.bf16.mxu0 %v3283_v0  ;;  %2773 = vmatprep.subr.bf16.mxu1 %v3283_v0 }
  0x5f   : > { %2746 = vmatpush3.bf16.msra.mxu0 %v3063_v13  ;;  %2774 = vmatpush3.bf16.msra.mxu1 %v3064_v14 }
  0x60   : > { %2747 = vmatprep.subr.bf16.mxu0 %v3283_v0  ;;  %2775 = vmatprep.subr.bf16.mxu1 %v3283_v0 }
  0x63   : > { %2748 = vmatpush3.bf16.msra.mxu0 %v3065_v15  ;;  %2776 = vmatpush3.bf16.msra.mxu1 %v3066_v16 }
  0x64   : > { %2789 = vmatprep.subr.bf16.mxu0 %v3283_v0  ;;  %2817 = vmatprep.subr.bf16.mxu1 %v3078_v31 }
  0x66   : > { %2750 = vmatmul.mubr.bf16.vlgmr.msra.gmra.mxu0 %v3067_v17  ;;  %2778 = vmatmul.mubr.bf16.vlgmr.msra.gmra.mxu1 %v3067_v17 }
  0x67   : > { %2790 = vmatpush3.bf16.msra.mxu0 %v3068_v18  ;;  %2781 = vmatprep.mubr.msk.bf16.mxu1 %vm3284_vm0, %v3283_v0 }
  0x68   : > { %2791 = vmatprep.subr.bf16.mxu0 %v3283_v0  ;;  %2753 = vmatprep.mubr.msk.bf16.mxu0 %vm3284_vm0, %v3283_v0 }
  0x69   : > { %2818 = vmatpush3.bf16.msra.mxu1 %v3078_v31 }
  0x6a   : > { %2819 = vmatprep.subr.bf16.mxu1 %v3080_v33 }
  0x6b   : > { %2792 = vmatpush3.bf16.msra.mxu0 %v3069_v19 }
  0x6c   : > { %2793 = vmatprep.subr.bf16.mxu0 %v3283_v0 }
  0x6d   : > { %2820 = vmatpush3.bf16.msra.mxu1 %v3080_v33 }
  0x6e   : > { %2754 = vmatmul.mubr.bf16.gmra.mxu0 %v3070_v20  ;;  %2782 = vmatmul.mubr.bf16.gmra.mxu1 %v3070_v20 }
  0x6f   : > { %2794 = vmatpush3.bf16.msra.mxu0 %v3071_v21  ;;  %2785 = vmatprep.mubr.msk.bf16.mxu1 %vm3284_vm0, %v3283_v0 }
  0x70   : > { %2795 = vmatprep.subr.bf16.mxu0 %v3283_v0  ;;  %2757 = vmatprep.mubr.msk.bf16.mxu0 %vm3284_vm0, %v3283_v0 }
  0x71   : > { %2821 = vmatprep.subr.bf16.mxu1 %v3082_v35 }
  0x72   : > { %2822 = vmatpush3.bf16.msra.mxu1 %v3082_v35 }
  0x73   : > { %2796 = vmatpush3.bf16.msra.mxu0 %v3072_v22  ;;  %2823 = vmatprep.subr.bf16.mxu1 %v3084_v37 }
  0x74   : > { %2797 = vmatprep.subr.bf16.mxu0 %v3283_v0 }
  0x76   : > { %2758 = vmatmul.mubr.bf16.gmra.mxu0 %v3073_v23  ;;  %2786 = vmatmul.mubr.bf16.gmra.mxu1 %v3073_v23 }
  0x77   : > { %2798 = vmatpush3.bf16.msra.mxu0 %v3074_v24  ;;  %2805 = vmatprep.mubr.msk.bf16.mxu0 %vm3284_vm0, %v3283_v0 }
  0x78   : > { %2799 = vmatprep.subr.bf16.mxu0 %v3283_v0  ;;  %2824 = vmatpush3.bf16.msra.mxu1 %v3084_v37 }
  0x79   : > { %2825 = vmatprep.subr.bf16.mxu1 %v3086_v39 }
  0x7b   : > { %2800 = vmatpush3.bf16.msra.mxu0 %v3075_v25 }
  0x7c   : > { %2801 = vmatprep.subr.bf16.mxu0 %v3283_v0  ;;  %2826 = vmatpush3.bf16.msra.mxu1 %v3086_v39 }
  0x7d   : > { %2827 = vmatprep.subr.bf16.mxu1 %v3088_v41 }
  0x7f   : > { %2802 = vmatpush3.bf16.msra.mxu0 %v3076_v26  ;;  %v2523_v26 = vld [vmem:[%s3677_s3] ss:$0 sm:$0xff] }
  0x80   : > { %2803 = vmatprep.subr.bf16.mxu0 %v3283_v0  ;;  %2828 = vmatpush3.bf16.msra.mxu1 %v3088_v41 }
  0x81   : > { %2829 = vmatprep.subr.bf16.mxu1 %v3090_v43 }
  0x83   : > { %2804 = vmatpush3.bf16.msra.mxu0 %v3077_v27 }
  0x84   : > { %2837 = vmatprep.subr.bf16.mxu0 %v3079_v32  ;;  %2830 = vmatpush3.bf16.msra.mxu1 %v3090_v43 }
  0x85   : > { %2831 = vmatprep.subr.bf16.mxu1 %v3093_v45 }
  0x86   : > { %2806 = vmatmul.mubr.bf16.vlgmr.msra.gmra.mxu0 %v3067_v17 }
  0x87   : > { %2809 = vmatprep.mubr.msk.bf16.mxu0 %vm3284_vm0, %v3283_v0  ;;  %2838 = vmatpush3.bf16.msra.mxu0 %v3079_v32 }
  0x88   : > { %2839 = vmatprep.subr.bf16.mxu0 %v3081_v34  ;;  %2832 = vmatpush3.bf16.msra.mxu1 %v3093_v45 }
  0x89   : > { %2857 = vmatprep.subr.bf16.mxu1 %v3532_v47 }
  0x8b   : > { %2840 = vmatpush3.bf16.msra.mxu0 %v3081_v34 }
  0x8c   : > { %2841 = vmatprep.subr.bf16.mxu0 %v3083_v36 }
  0x8e   : > { %2810 = vmatmul.mubr.bf16.gmra.mxu0 %v3070_v20 }
  0x8f   : > { %2813 = vmatprep.mubr.msk.bf16.mxu0 %vm3284_vm0, %v3283_v0  ;;  %2842 = vmatpush3.bf16.msra.mxu0 %v3083_v36 }
  0x90   : > { %2843 = vmatprep.subr.bf16.mxu0 %v3085_v38 }
  0x93   : > { %2844 = vmatpush3.bf16.msra.mxu0 %v3085_v38 }
  0x94   : > { %2845 = vmatprep.subr.bf16.mxu0 %v3087_v40 }
  0x96   : > { %2814 = vmatmul.mubr.bf16.gmra.mxu0 %v3073_v23  ;;  %v2522_v23 = vld [vmem:[%s3676_s2] ss:$0 sm:$0xff] }
  0x97   : > { %2846 = vmatpush3.bf16.msra.mxu0 %v3087_v40 }
  0x98   : > { %2847 = vmatprep.subr.bf16.mxu0 %v3089_v42 }
  0x9b   : > { %2848 = vmatpush3.bf16.msra.mxu0 %v3089_v42 }
  0x9c   : > { %2849 = vmatprep.subr.bf16.mxu0 %v3092_v44 }
  0x9f   : > { %2850 = vmatpush3.bf16.msra.mxu0 %v3092_v44 }
  0xa0   : > { %2851 = vmatprep.subr.bf16.mxu0 %v3094_v46 }
  0xa3   : > { %2852 = vmatpush3.bf16.msra.mxu0 %v3094_v46 }
  0xa4   : > { %2877 = vmatprep.subr.bf16.mxu0 %v3283_v0 }
 0x126   : > { %v732_v48 = vpop.f32.mrf.mxu0  ;;  %v852_v49 = vpop.f32.mrf.mxu1 }
 0x127   : > { %v1001_v9 = vrot.slane %v852_v49, 1 }
 0x128   : > { %v2751_v50 = vpop.f32.mrf.mxu0  ;;  %v2779_v51 = vpop.f32.mrf.mxu1 }
 0x12a   : > { %v735_v52 = vpop.f32.mrf.mxu0  ;;  %v855_v53 = vpop.f32.mrf.mxu1 }
 0x12b   : > { %v1002_v10 = vrot.slane %v855_v53, 1 }
 0x12c   : > { %v2752_v54 = vpop.f32.mrf.mxu0  ;;  %v2780_v55 = vpop.f32.mrf.mxu1 }
 0x12d   : > { %v1003_v13 = vsel %vm1000_vm4, %v1001_v9, %v1002_v10 }
 0x12e   : > { %v740_v56 = vpop.f32.mrf.mxu0  ;;  %v860_v57 = vpop.f32.mrf.mxu1  ;;  %v1014_v18 = vadd.f32 %v1003_v13, %v732_v48 }
 0x12f   : > { %v1004_v14 = vrot.slane %v860_v57, 1 }
 0x130   : > { %v2755_v58 = vpop.f32.mrf.mxu0  ;;  %v2783_v59 = vpop.f32.mrf.mxu1 }
 0x131   : > { %v1005_v20 = vsel %vm1000_vm4, %v1002_v10, %v1004_v14  ;;  %v3124_v10 = vld [vmem:[#allocation10 + $0xa0] sm:$0xff]  }
 0x132   : > { %v743_v60 = vpop.f32.mrf.mxu0  ;;  %v863_v61 = vpop.f32.mrf.mxu1  ;;  %v1015_v29 = vadd.f32 %v1005_v20, %v735_v52 }
 0x133   : > { %v1006_v21 = vrot.slane %v863_v61, 1 }
 0x134   : > { %v2756_v62 = vpop.f32.mrf.mxu0  ;;  %v2784_v63 = vpop.f32.mrf.mxu1 }
 0x135   : > { %v1007_v32 = vsel %vm1000_vm4, %v1004_v14, %v1006_v21 }
 0x136   : > { %v748_v1 = vpop.f32.mrf.mxu0  ;;  %v868_v2 = vpop.f32.mrf.mxu1  ;;  %v1016_v39 = vadd.f32 %v1007_v32, %v740_v56  ;;  %v3100_v32 = vld [vmem:[#allocation8 + $0x98] sm:$0xff]  }
 0x137   : > { %v1008_v33 = vrot.slane %v868_v2, 1 }
 0x138   : > { %v2759_v3 = vpop.f32.mrf.mxu0  ;;  %v2787_v4 = vpop.f32.mrf.mxu1 }
 0x139   : > { %v1009_v43 = vsel %vm1000_vm4, %v1006_v21, %v1008_v33  ;;  %v3101_v33 = vld [vmem:[#allocation8 + $0x90] sm:$0xff]  }
 0x13a   : > { %v750_v5 = vpop.f32.mrf.mxu0  ;;  %v871_v6 = vpop.f32.mrf.mxu1  ;;  %v1017_v50 = vadd.f32 %v1009_v43, %v743_v60  ;;  %v3110_v43 = vld [vmem:[#allocation10 + $0x20] sm:$0xff]  }
 0x13c   : > { %v2760_v7 = vpop.f32.mrf.mxu0  ;;  %v2788_v8 = vpop.f32.mrf.mxu1 }
 0x13d   : > { %v1119_v7 = vld [vmem:[#allocation2] sm:$0xf] }
 0x146   : > { %v973_v11 = vpop.f32.mrf.mxu0 }
 0x147   : > { %v1024_v16 = vrot.slane %v973_v11, 2 }
 0x148   : > { %v2807_v12 = vpop.f32.mrf.mxu0 }
 0x14a   : > { %v976_v15 = vpop.f32.mrf.mxu0 }
 0x14b   : > { %v1025_v17 = vrot.slane %v976_v15, 2 }
 0x14c   : > { %v2808_v19 = vpop.f32.mrf.mxu0 }
 0x14d   : > { %v1026_v22 = vsel %vm1023_vm5, %v1024_v16, %v1025_v17 }
 0x14e   : > { %v1037_v24 = vadd.f32 %v1026_v22, %v1014_v18  ;;  %v981_v25 = vpop.f32.mrf.mxu0  ;;  %v1123_v18 = vld [vmem:[#allocation2 + $0x8] sm:$0x1] }
 0x14f   : > { %v1027_v27 = vrot.slane %v981_v25, 2 }
 0x150   : > { %v1048_v30 = vmul.f32 %v2522_v23, %v1037_v24  ;;  %v2811_v31 = vpop.f32.mrf.mxu0 }
 0x151   : > { %v1028_v34 = vsel %vm1023_vm5, %v1025_v17, %v1027_v27  ;;  %v3099_v31 = vld [vmem:[#allocation8 + $0xa0] sm:$0xff]  }
 0x152   : > { %v1059_v35 = vadd.f32 %v2523_v26, %v1048_v30  ;;  %v1038_v36 = vadd.f32 %v1028_v34, %v1015_v29  ;;  %v984_v37 = vpop.f32.mrf.mxu0  ;;  %v3097_v29 = vld [vmem:[#allocation8 + $0xb0] sm:$0xff]   ;;  %v3098_v30 = vld [vmem:[#allocation8 + $0xa8] sm:$0xff]  }
 0x153   : > { %v1029_v38 = vrot.slane %v984_v37, 2  ;;  %v3102_v34 = vld [vmem:[#allocation8 + $0x88] sm:$0xff]   ;;  %v3106_v37 = vld [vmem:[#allocation10 + $0x30] sm:$0xff]  }
 0x154   : > { %v1063_v40 = vmax.f32 %v1059_v35, 0.0  ;;  %v1049_v41 = vmul.f32 %v2522_v23, %v1038_v36  ;;  %v2812_v42 = vpop.f32.mrf.mxu0  ;;  %v3104_v35 = vld [vmem:[#allocation10 + $0x38] sm:$0xff]  }
 0x155   : > { %v1030_v44 = vsel %vm1023_vm5, %v1027_v27, %v1029_v38  ;;  %v3105_v36 = vld [vmem:[#allocation10 + $0x78] sm:$0xff]  }
 0x156   : > { %1067 = vst [vmem:[#allocation5] sm:$0xff] %v1063_v40  ;;  %v1060_v45 = vadd.f32 %v2523_v26, %v1049_v41  ;;  %v1039_v46 = vadd.f32 %v1030_v44, %v1016_v39  ;;  %v989_v48 = vpop.f32.mrf.mxu0  ;;  %v3108_v39 = vld [vmem:[#allocation10 + $0x28] sm:$0xff]   ;;  %v1529_v41 = vld [vmem:[#allocation3] sm:$0x1]  ;;  %v3111_v44 = vld [vmem:[#allocation10 + $0x60] sm:$0xff]  }
 0x157   : > { %v1031_v49 = vrot.slane %v989_v48, 2  ;;  %v3109_v40 = vld [vmem:[#allocation10 + $0x68] sm:$0xff]   ;;  %v1530_v42 = vsel %vm3526_vm3, 0, %v1529_v41  ;;  %v3114_v48 = vld [vmem:[#allocation10 + $0x10] sm:$0xff]   ;;  %v3121_v41 = vld [vmem:[#allocation10 + $0xb8] sm:$0xff]  }
 0x158   : > { %v1064_v51 = vmax.f32 %v1060_v45, 0.0  ;;  %v1050_v52 = vmul.f32 %v2522_v23, %v1039_v46  ;;  %v2815_v53 = vpop.f32.mrf.mxu0  ;;  %1531 = vst [vmem:[#allocation3] sm:$0x1] %v1530_v42  ;;  %v3112_v45 = vld [vmem:[#allocation10 + $0x18] sm:$0xff]  }
 0x159   : > { %v1032_v54 = vsel %vm1023_vm5, %v1029_v38, %v1031_v49  ;;  %v3107_v38 = vld [vmem:[#allocation10 + $0x70] sm:$0xff]   ;;  %v3113_v46 = vld [vmem:[#allocation10 + $0x58] sm:$0xff]   ;;  %v3119_v53 = vld [vmem:[#allocation10 + $0x40] sm:$0xff]  }
 0x15a   : > { %1068 = vst [vmem:[#allocation5 + $0x8] sm:$0xff] %v1064_v51  ;;  %v1061_v55 = vadd.f32 %v2523_v26, %v1050_v52  ;;  %v1040_v56 = vadd.f32 %v1032_v54, %v1017_v50  ;;  %v992_v57 = vpop.f32.mrf.mxu0  ;;  %v3115_v49 = vld [vmem:[#allocation10 + $0x50] sm:$0xff]   ;;  %v3116_v50 = vld [vmem:[#allocation10 + $0x8] sm:$0xff]   ;;  %v3118_v52 = vld [vmem:[#allocation10] sm:$0xff]  }
 0x15b   : > { %v3117_v51 = vld [vmem:[#allocation10 + $0x48] sm:$0xff]  }
 0x15c   : > { %v1065_v58 = vmax.f32 %v1061_v55, 0.0  ;;  %v1051_v59 = vmul.f32 %v2522_v23, %v1040_v56  ;;  %v2816_v61 = vpop.f32.mrf.mxu0 }
 0x15e   : > { %1069 = vst [vmem:[#allocation5 + $0x10] sm:$0xff] %v1065_v58  ;;  %v1062_v62 = vadd.f32 %v2523_v26, %v1051_v59 }
 0x160   : > { %v1066_v63 = vmax.f32 %v1062_v62, 0.0 }
 0x161   : > { %v1071_v60 = vld [vmem:[#allocation5] ss:$2 sm:$0xff]  ;;  %v1075_v1 = vld [vmem:[#allocation5 + $0x1] ss:$2 sm:$0xff] }
 0x162   : > { %1070 = vst [vmem:[#allocation5 + $0x18] sm:$0xff] %v1066_v63  ;;  %v1078_v2 = vmax.f32 %v1071_v60, %v1075_v1 }
 0x164   : > { %1080 = vst [vmem:[%s599_s0] sm:$0xff] %v1078_v2  ;;  %v2612_v3 = vpack.c.bf16 %v1078_v2, %v1078_v2 }
 0x166   : > { %v1097_v4 = vshrl.u32 %v2612_v3, 16  ;;  %v1100_v6 = vshll.u32 %v2612_v3, 16 }
 0x168   : > { %v1099_v5 = vrot.slane %v1097_v4, 7 }
 0x169   : > { %v1073_v8 = vld [vmem:[#allocation5 + $0x10] ss:$2 sm:$0xff]  ;;  %v1077_v9 = vld [vmem:[#allocation5 + $0x11] ss:$2 sm:$0xff] }
 0x16a   : > { %v1079_v11 = vmax.f32 %v1073_v8, %v1077_v9  ;;  %v1102_v12 = vor.u32 %v1100_v6, %v1099_v5  ;;  %v1103_v19 = vrot.slane %v1099_v5, 4 }
 0x16c   : > { %1081 = vst [vmem:[%s599_s0 + $0x8] sm:$0xff] %v1079_v11  ;;  %v2613_v13 = vpack.c.bf16 %v1079_v11, %v1079_v11  ;;  %v1120_v14 = vsel %vm3554_vm8, %v1102_v12, %v1119_v7  ;;  %s2493_s0 = sshll.u32 %s3700_s22, 2 }
 0x16d   : > { %1121 = vst [vmem:[#allocation2] sm:$0xf] %v1120_v14  ;;  %s607_s30 = scalar_lea.vmem %s3689_s15, %s2493_s0 }
 0x16e   : > { %v1105_v15 = vshrl.u32 %v2613_v13, 16  ;;  %v1108_v17 = vshll.u32 %v2613_v13, 16 }
 0x170   : > { %v1107_v16 = vrot.slane %v1105_v15, 7 }
 0x172   : > { %v1110_v20 = vor.u32 %v1108_v17, %v1107_v16  ;;  %v1112_v21 = vrot.slane %v1107_v16, 4  ;;  %v2552_v16 = vld [vmem:[%s3679_s5] ss:$0 sm:$0xff] }
 0x174   : > { %v1111_v22 = vsel %vm1095_vm10, %v1103_v19, %v1110_v20  ;;  %v1124_v23 = vsel %vm3526_vm3, %v1112_v21, %v1123_v18  ;;  %v2553_v19 = vld [vmem:[%s3680_s6] ss:$0 sm:$0xff] }
 0x175   : > { %1122 = vst [vmem:[#allocation2 + $0x4] sm:$0xf] %v1111_v22  ;;  %1125 = vst [vmem:[#allocation2 + $0x8] sm:$0x1] %v1124_v23 }
 0x17c   : > { %v3091_v24 = vld [vmem:[#allocation2] sm:$0xff]   ;;  %v1126_v25 = vld [vmem:[#allocation2 + $0x8] sm:$0xf] }
 0x17d   : > { %v1127_v26 = vsel %vm3554_vm8, 0, %v1126_v25  ;;  %2833 = vmatprep.mubr.bf16.mxu1 %v3091_v24  ;;  %2853 = vmatprep.mubr.bf16.mxu0 %v3091_v24 }
 0x17e   : > { %1128 = vst [vmem:[#allocation2 + $0x8] sm:$0xf] %v1127_v26 }
 0x185   : > { %v3096_v27 = vld [vmem:[#allocation2 + $0x8] ss:$0 sps:$4 sm:$0xff]  }
 0x186   : > { %2834 = vmatmul.mubr.bf16.vlgmr.msra.gmra.mxu1 %v3096_v27  ;;  %2854 = vmatmul.mubr.bf16.vlgmr.msra.gmra.mxu0 %v3096_v27 }
 0x187   : > { %2858 = vmatpush3.bf16.msra.mxu1 %v3532_v47  ;;  %2873 = vmatprep.mubr.bf16.mxu1 %v3091_v24  ;;  %v3103_v47 = vld [vmem:[#allocation8 + $0x80] sm:$0xff]  }
 0x188   : > { %2859 = vmatprep.subr.bf16.mxu1 %v3097_v29  ;;  %2893 = vmatprep.mubr.msk.bf16.mxu0 %vm3284_vm0, %v3283_v0 }
 0x189   : > { %2878 = vmatpush3.bf16.msra.mxu0 %v3104_v35 }
 0x18a   : > { %2879 = vmatprep.subr.bf16.mxu0 %v3283_v0 }
 0x18b   : > { %2860 = vmatpush3.bf16.msra.mxu1 %v3097_v29 }
 0x18c   : > { %2861 = vmatprep.subr.bf16.mxu1 %v3098_v30 }
 0x18d   : > { %2880 = vmatpush3.bf16.msra.mxu0 %v3106_v37 }
 0x18e   : > { %2881 = vmatprep.subr.bf16.mxu0 %v3283_v0 }
 0x18f   : > { %2862 = vmatpush3.bf16.msra.mxu1 %v3098_v30 }
 0x190   : > { %2863 = vmatprep.subr.bf16.mxu1 %v3099_v31 }
 0x191   : > { %2882 = vmatpush3.bf16.msra.mxu0 %v3108_v39 }
 0x192   : > { %2883 = vmatprep.subr.bf16.mxu0 %v3283_v0 }
 0x193   : > { %2864 = vmatpush3.bf16.msra.mxu1 %v3099_v31 }
 0x194   : > { %2865 = vmatprep.subr.bf16.mxu1 %v3100_v32 }
 0x195   : > { %2884 = vmatpush3.bf16.msra.mxu0 %v3110_v43  ;;  %v3122_v43 = vld [vmem:[#allocation10 + $0xb0] sm:$0xff]  }
 0x196   : > { %2885 = vmatprep.subr.bf16.mxu0 %v3283_v0 }
 0x197   : > { %2866 = vmatpush3.bf16.msra.mxu1 %v3100_v32 }
 0x198   : > { %2867 = vmatprep.subr.bf16.mxu1 %v3101_v33 }
 0x199   : > { %2886 = vmatpush3.bf16.msra.mxu0 %v3112_v45  ;;  %v3125_v45 = vld [vmem:[#allocation10 + $0x98] sm:$0xff]  }
 0x19a   : > { %2887 = vmatprep.subr.bf16.mxu0 %v3283_v0 }
 0x19b   : > { %2868 = vmatpush3.bf16.msra.mxu1 %v3101_v33 }
 0x19c   : > { %2869 = vmatprep.subr.bf16.mxu1 %v3102_v34 }
 0x19d   : > { %2888 = vmatpush3.bf16.msra.mxu0 %v3114_v48  ;;  %v3127_v48 = vld [vmem:[#allocation10 + $0x88] sm:$0xff]  }
 0x19e   : > { %2889 = vmatprep.subr.bf16.mxu0 %v3283_v0 }
 0x19f   : > { %2870 = vmatpush3.bf16.msra.mxu1 %v3102_v34  ;;  %v1546_v34 = vld [vmem:[#allocation3] sm:$0xf] }
 0x1a0   : > { %2871 = vmatprep.subr.bf16.mxu1 %v3103_v47 }
 0x1a1   : > { %2890 = vmatpush3.bf16.msra.mxu0 %v3116_v50  ;;  %v3129_v50 = vld [vmem:[#allocation11 + $0x38] sm:$0xff]  }
 0x1a2   : > { %2891 = vmatprep.subr.bf16.mxu0 %v3283_v0 }
 0x1a3   : > { %2872 = vmatpush3.bf16.msra.mxu1 %v3103_v47  ;;  %v1549_v47 = vld [vmem:[#allocation3 + $0x4] sm:$0x1] }
 0x1a4   : > { %2897 = vmatprep.subr.bf16.mxu1 %v3283_v0 }
 0x1a5   : > { %2892 = vmatpush3.bf16.msra.mxu0 %v3118_v52  ;;  %v3131_v52 = vld [vmem:[#allocation11 + $0x30] sm:$0xff]  }
 0x1a6   : > { %2874 = vmatmul.mubr.bf16.vlgmr.msra.gmra.mxu1 %v3096_v27  ;;  %2917 = vmatprep.subr.bf16.mxu0 %v3283_v0 }
 0x1a7   : > { %2913 = vmatprep.mubr.msk.bf16.mxu1 %vm3284_vm0, %v3283_v0  ;;  %2898 = vmatpush3.bf16.msra.mxu1 %v3105_v36 }
 0x1a8   : > { %2899 = vmatprep.subr.bf16.mxu1 %v3283_v0 }
 0x1ab   : > { %2900 = vmatpush3.bf16.msra.mxu1 %v3107_v38 }
 0x1ac   : > { %2901 = vmatprep.subr.bf16.mxu1 %v3283_v0 }
 0x1af   : > { %2902 = vmatpush3.bf16.msra.mxu1 %v3109_v40 }
 0x1b0   : > { %2903 = vmatprep.subr.bf16.mxu1 %v3283_v0 }
 0x1b3   : > { %2904 = vmatpush3.bf16.msra.mxu1 %v3111_v44  ;;  %v3123_v44 = vld [vmem:[#allocation10 + $0xa8] sm:$0xff]  }
 0x1b4   : > { %2905 = vmatprep.subr.bf16.mxu1 %v3283_v0 }
 0x1b7   : > { %2906 = vmatpush3.bf16.msra.mxu1 %v3113_v46  ;;  %v3126_v46 = vld [vmem:[#allocation10 + $0x90] sm:$0xff]  }
 0x1b8   : > { %2907 = vmatprep.subr.bf16.mxu1 %v3283_v0 }
 0x1bb   : > { %2908 = vmatpush3.bf16.msra.mxu1 %v3115_v49  ;;  %v3128_v49 = vld [vmem:[#allocation10 + $0x80] sm:$0xff]  }
 0x1bc   : > { %2909 = vmatprep.subr.bf16.mxu1 %v3283_v0 }
 0x1bf   : > { %2910 = vmatpush3.bf16.msra.mxu1 %v3117_v51  ;;  %v3130_v51 = vld [vmem:[#allocation11 + $0x78] sm:$0xff]  }
 0x1c0   : > { %2911 = vmatprep.subr.bf16.mxu1 %v3283_v0 }
 0x1c3   : > { %2912 = vmatpush3.bf16.msra.mxu1 %v3119_v53  ;;  %v3132_v53 = vld [vmem:[#allocation11 + $0x70] sm:$0xff]  }
 0x1c4   : > { %2937 = vmatprep.subr.bf16.mxu1 %v3283_v0 }
 0x246   : > { %v2835_v54 = vpop.f32.mrf.mxu1  ;;  %v2855_v55 = vpop.f32.mrf.mxu0 }
 0x247   : > { %v1485_v2 = vrot.slane %v2855_v55, 1  ;;  %v3133_v54 = vld [vmem:[#allocation11 + $0x28] sm:$0xff]  }
 0x248   : > { %v1240_v56 = vpop.f32.mrf.mxu1  ;;  %v1352_v57 = vpop.f32.mrf.mxu0  ;;  %v3134_v55 = vld [vmem:[#allocation11 + $0x68] sm:$0xff]  }
 0x249   : > { %v1482_v3 = vrot.slane %v1352_v57, 1 }
 0x24a   : > { %v2836_v58 = vpop.f32.mrf.mxu1  ;;  %v2856_v59 = vpop.f32.mrf.mxu0 }
 0x24b   : > { %v3135_v58 = vld [vmem:[#allocation11 + $0x20] sm:$0xff]  }
 0x24c   : > { %v1243_v61 = vpop.f32.mrf.mxu1  ;;  %v1355_v62 = vpop.f32.mrf.mxu0  ;;  %v3136_v59 = vld [vmem:[#allocation11 + $0x60] sm:$0xff]  }
 0x24d   : > { %v1483_v60 = vrot.slane %v1355_v62, 1  ;;  %v3138_v62 = vld [vmem:[#allocation11 + $0x58] sm:$0xff]  }
 0x24f   : > { %v1484_v5 = vsel %vm1000_vm4, %v1482_v3, %v1483_v60  ;;  %v1486_v6 = vsel %vm1000_vm4, %v1483_v60, %v1485_v2  ;;  %v3141_v60 = vld [vmem:[#allocation11 + $0x8] sm:$0xff]   ;;  %v3143_v2 = vld [vmem:[#allocation11] sm:$0xff]  }
 0x250   : > { %v1489_v12 = vadd.f32 %v1484_v5, %v1240_v56  ;;  %v1490_v13 = vadd.f32 %v1486_v6, %v1243_v61  ;;  %v1915_v56 = vld [vmem:[#allocation4] sm:$0x1]  ;;  %v3144_v3 = vld [vmem:[#allocation11 + $0x40] sm:$0xff]  }
 0x251   : > { %v1916_v57 = vsel %vm3526_vm3, 0, %v1915_v56  ;;  %v3137_v61 = vld [vmem:[#allocation11 + $0x18] sm:$0xff]  }
 0x252   : > { %1917 = vst [vmem:[#allocation4] sm:$0x1] %v1916_v57 }
 0x266   : > { %v2875_v63 = vpop.f32.mrf.mxu1 }
 0x267   : > { %v1497_v8 = vrot.slane %v2875_v63, 2  ;;  %v3140_v63 = vld [vmem:[#allocation11 + $0x50] sm:$0xff]  }
 0x268   : > { %v1465_v1 = vpop.f32.mrf.mxu1 }
 0x269   : > { %v1494_v9 = vrot.slane %v1465_v1, 2  ;;  %v3142_v1 = vld [vmem:[#allocation11 + $0x48] sm:$0xff]  }
 0x26a   : > { %v2876_v4 = vpop.f32.mrf.mxu1 }
 0x26c   : > { %v1468_v7 = vpop.f32.mrf.mxu1 }
 0x26d   : > { %v1495_v11 = vrot.slane %v1468_v7, 2 }
 0x26f   : > { %v1496_v14 = vsel %vm1023_vm5, %v1494_v9, %v1495_v11  ;;  %v1498_v15 = vsel %vm1023_vm5, %v1495_v11, %v1497_v8 }
 0x270   : > { %v1501_v17 = vadd.f32 %v1496_v14, %v1489_v12  ;;  %v1502_v18 = vadd.f32 %v1498_v15, %v1490_v13 }
 0x272   : > { %v1510_v20 = vmul.f32 %v2552_v16, %v1501_v17  ;;  %v1511_v21 = vmul.f32 %v2552_v16, %v1502_v18 }
 0x274   : > { %v1519_v22 = vadd.f32 %v2553_v19, %v1510_v20  ;;  %v1520_v23 = vadd.f32 %v2553_v19, %v1511_v21 }
 0x276   : > { %v1521_v24 = vmax.f32 %v1519_v22, 0.0  ;;  %v1522_v25 = vmax.f32 %v1520_v23, 0.0 }
 0x278   : > { %1523 = vst [vmem:[#allocation5] sm:$0xff] %v1521_v24  ;;  %1524 = vst [vmem:[#allocation5 + $0x8] sm:$0xff] %v1522_v25  ;;  %v2580_v24 = vld [vmem:[%s3682_s8] ss:$0 sm:$0xff] }
 0x27f   : > { %v1525_v26 = vld [vmem:[#allocation5] ss:$2 sm:$0xff]  ;;  %v1526_v27 = vld [vmem:[#allocation5 + $0x1] ss:$2 sm:$0xff] }
 0x280   : > { %v1527_v29 = vmax.f32 %v1525_v26, %v1526_v27  ;;  %v2581_v26 = vld [vmem:[%s3683_s9] ss:$0 sm:$0xff] }
 0x282   : > { %1528 = vst [vmem:[%s603_s18] sm:$0xff] %v1527_v29  ;;  %v2614_v30 = vpack.c.bf16 %v1527_v29, %v1527_v29  ;;  %s2494_s18 = sshll.u32 %s3700_s22, 1 }
 0x283   : > { %s611_s26 = scalar_lea.vmem %s3690_s16, %s2494_s18 }
 0x284   : > { %v1537_v31 = vshrl.u32 %v2614_v30, 16  ;;  %v1540_v33 = vshll.u32 %v2614_v30, 16 }
 0x286   : > { %v1539_v32 = vrot.slane %v1537_v31, 7 }
 0x288   : > { %v1542_v35 = vor.u32 %v1540_v33, %v1539_v32  ;;  %v1543_v36 = vrot.slane %v1539_v32, 4 }
 0x28a   : > { %v1547_v37 = vsel %vm3554_vm8, %v1542_v35, %v1546_v34  ;;  %v1550_v38 = vsel %vm3526_vm3, %v1543_v36, %v1549_v47 }
 0x28b   : > { %1548 = vst [vmem:[#allocation3] sm:$0xf] %v1547_v37  ;;  %1551 = vst [vmem:[#allocation3 + $0x4] sm:$0x1] %v1550_v38  ;;  %v1933_v37 = vld [vmem:[#allocation4] sm:$0x7] }
 0x292   : > { %v1552_v39 = vld [vmem:[#allocation3 + $0x4] sm:$0xf] }
 0x293   : > { %v1553_v40 = vsel %vm3554_vm8, 0, %v1552_v39 }
 0x294   : > { %1554 = vst [vmem:[#allocation3 + $0x4] sm:$0xf] %v1553_v40 }
 0x29b   : > { %v3120_v42 = vld [vmem:[#allocation3] sm:$0xff]  }
 0x29c   : > { %2894 = vmatmul.mubr.bf16.vlgmr.msra.gmra.mxu0 %v3120_v42  ;;  %2914 = vmatmul.mubr.bf16.vlgmr.msra.gmra.mxu1 %v3120_v42 }
 0x29d   : > { %2918 = vmatpush3.bf16.msra.mxu0 %v3121_v41  ;;  %2933 = vmatprep.mubr.msk.bf16.mxu0 %vm3284_vm0, %v3283_v0 }
 0x29e   : > { %2919 = vmatprep.subr.bf16.mxu0 %v3283_v0  ;;  %2953 = vmatprep.mubr.msk.bf16.mxu1 %vm3284_vm0, %v3283_v0 }
 0x29f   : > { %2938 = vmatpush3.bf16.msra.mxu1 %v3129_v50  ;;  %v3152_v50 = vld [vmem:[#allocation11 + $0x80] sm:$0xff]  }
 0x2a0   : > { %2939 = vmatprep.subr.bf16.mxu1 %v3283_v0 }
 0x2a1   : > { %2920 = vmatpush3.bf16.msra.mxu0 %v3122_v43 }
 0x2a2   : > { %2921 = vmatprep.subr.bf16.mxu0 %v3283_v0 }
 0x2a3   : > { %2940 = vmatpush3.bf16.msra.mxu1 %v3131_v52 }
 0x2a4   : > { %2941 = vmatprep.subr.bf16.mxu1 %v3283_v0 }
 0x2a5   : > { %2922 = vmatpush3.bf16.msra.mxu0 %v3123_v44  ;;  %v3146_v44 = vld [vmem:[#allocation11 + $0xb0] sm:$0xff]  }
 0x2a6   : > { %2923 = vmatprep.subr.bf16.mxu0 %v3283_v0 }
 0x2a7   : > { %2942 = vmatpush3.bf16.msra.mxu1 %v3133_v54 }
 0x2a8   : > { %2943 = vmatprep.subr.bf16.mxu1 %v3283_v0 }
 0x2a9   : > { %2924 = vmatpush3.bf16.msra.mxu0 %v3124_v10  ;;  %v3147_v10 = vld [vmem:[#allocation11 + $0xa8] sm:$0xff]  }
 0x2aa   : > { %2925 = vmatprep.subr.bf16.mxu0 %v3283_v0 }
 0x2ab   : > { %2944 = vmatpush3.bf16.msra.mxu1 %v3135_v58 }
 0x2ac   : > { %2945 = vmatprep.subr.bf16.mxu1 %v3283_v0 }
 0x2ad   : > { %2926 = vmatpush3.bf16.msra.mxu0 %v3125_v45  ;;  %v3148_v45 = vld [vmem:[#allocation11 + $0xa0] sm:$0xff]  }
 0x2ae   : > { %2927 = vmatprep.subr.bf16.mxu0 %v3283_v0 }
 0x2af   : > { %2946 = vmatpush3.bf16.msra.mxu1 %v3137_v61 }
 0x2b0   : > { %2947 = vmatprep.subr.bf16.mxu1 %v3283_v0 }
 0x2b1   : > { %2928 = vmatpush3.bf16.msra.mxu0 %v3126_v46  ;;  %v3149_v46 = vld [vmem:[#allocation11 + $0x98] sm:$0xff]  }
 0x2b2   : > { %2929 = vmatprep.subr.bf16.mxu0 %v3283_v0 }
 0x2b3   : > { %2948 = vmatpush3.bf16.msra.mxu1 %v3139_v28 }
 0x2b4   : > { %2949 = vmatprep.subr.bf16.mxu1 %v3283_v0 }
 0x2b5   : > { %2930 = vmatpush3.bf16.msra.mxu0 %v3127_v48  ;;  %v3150_v48 = vld [vmem:[#allocation11 + $0x90] sm:$0xff]  }
 0x2b6   : > { %2931 = vmatprep.subr.bf16.mxu0 %v3283_v0 }
 0x2b7   : > { %2950 = vmatpush3.bf16.msra.mxu1 %v3141_v60 }
 0x2b8   : > { %2951 = vmatprep.subr.bf16.mxu1 %v3283_v0 }
 0x2b9   : > { %2932 = vmatpush3.bf16.msra.mxu0 %v3128_v49  ;;  %v3151_v49 = vld [vmem:[#allocation11 + $0x88] sm:$0xff]  }
 0x2ba   : > { %2957 = vmatprep.subr.bf16.mxu0 %v3283_v0 }
 0x2bb   : > { %2952 = vmatpush3.bf16.msra.mxu1 %v3143_v2 }
 0x2bc   : > { %2934 = vmatmul.mubr.bf16.vlgmr.msra.gmra.mxu0 %v3120_v42  ;;  %2977 = vmatprep.subr.bf16.mxu1 %v3283_v0  ;;  %v3145_v42 = vld [vmem:[#allocation11 + $0xb8] sm:$0xff]  }
 0x2bd   : > { %2973 = vmatprep.mubr.msk.bf16.mxu0 %vm3284_vm0, %v3283_v0  ;;  %2958 = vmatpush3.bf16.msra.mxu0 %v3130_v51 }
 0x2be   : > { %2959 = vmatprep.subr.bf16.mxu0 %v3283_v0 }
 0x2c1   : > { %2960 = vmatpush3.bf16.msra.mxu0 %v3132_v53 }
 0x2c2   : > { %2961 = vmatprep.subr.bf16.mxu0 %v3283_v0 }
 0x2c5   : > { %2962 = vmatpush3.bf16.msra.mxu0 %v3134_v55 }
 0x2c6   : > { %2963 = vmatprep.subr.bf16.mxu0 %v3283_v0 }
 0x2c9   : > { %2964 = vmatpush3.bf16.msra.mxu0 %v3136_v59 }
 0x2ca   : > { %2965 = vmatprep.subr.bf16.mxu0 %v3283_v0 }
 0x2cd   : > { %2966 = vmatpush3.bf16.msra.mxu0 %v3138_v62 }
 0x2ce   : > { %2967 = vmatprep.subr.bf16.mxu0 %v3283_v0 }
 0x2d1   : > { %2968 = vmatpush3.bf16.msra.mxu0 %v3140_v63  ;;  %v2607_v63 = vld [vmem:[%s3685_s11] ss:$0 sm:$0xff] }
 0x2d2   : > { %2969 = vmatprep.subr.bf16.mxu0 %v3283_v0 }
 0x2d5   : > { %2970 = vmatpush3.bf16.msra.mxu0 %v3142_v1  ;;  %v2608_v1 = vld [vmem:[%s3686_s12] ss:$0 sm:$0xff] }
 0x2d6   : > { %2971 = vmatprep.subr.bf16.mxu0 %v3283_v0 }
 0x2d9   : > { %2972 = vmatpush3.bf16.msra.mxu0 %v3144_v3 }
 0x35c   : > { %v1661_v4 = vpop.f32.mrf.mxu0  ;;  %v1766_v5 = vpop.f32.mrf.mxu1 }
 0x35d   : > { %v1881_v15 = vrot.slane %v1766_v5, 1 }
 0x35e   : > { %v2895_v6 = vpop.f32.mrf.mxu0  ;;  %v2915_v7 = vpop.f32.mrf.mxu1 }
 0x360   : > { %v1664_v8 = vpop.f32.mrf.mxu0  ;;  %v1769_v9 = vpop.f32.mrf.mxu1 }
 0x361   : > { %v1882_v13 = vrot.slane %v1769_v9, 1 }
 0x362   : > { %v2896_v11 = vpop.f32.mrf.mxu0  ;;  %v2916_v12 = vpop.f32.mrf.mxu1 }
 0x363   : > { %v1883_v17 = vsel %vm1000_vm4, %v1881_v15, %v1882_v13 }
 0x364   : > { %v1885_v21 = vadd.f32 %v1883_v17, %v1661_v4 }
 0x37c   : > { %v1872_v14 = vpop.f32.mrf.mxu0 }
 0x37d   : > { %v1888_v19 = vrot.slane %v1872_v14, 2 }
 0x37e   : > { %v2935_v16 = vpop.f32.mrf.mxu0 }
 0x380   : > { %v1875_v18 = vpop.f32.mrf.mxu0 }
 0x381   : > { %v1889_v20 = vrot.slane %v1875_v18, 2 }
 0x382   : > { %v2936_v22 = vpop.f32.mrf.mxu0 }
 0x383   : > { %v1890_v23 = vsel %vm1023_vm5, %v1888_v19, %v1889_v20 }
 0x384   : > { %v1892_v25 = vadd.f32 %v1890_v23, %v1885_v21 }
 0x386   : > { %v1900_v27 = vmul.f32 %v2580_v24, %v1892_v25 }
 0x388   : > { %v1908_v29 = vadd.f32 %v2581_v26, %v1900_v27 }
 0x38a   : > { %v1909_v30 = vmax.f32 %v1908_v29, 0.0 }
 0x38c   : > { %1910 = vst [vmem:[#allocation5] sm:$0xff] %v1909_v30 }
 0x393   : > { %v1911_v31 = vld [vmem:[#allocation5] ss:$2 sm:$0xf]  ;;  %v1912_v32 = vld [vmem:[#allocation5 + $0x1] ss:$2 sm:$0xf] }
 0x394   : > { %v1913_v33 = vmax.f32 %v1911_v31, %v1912_v32 }
 0x396   : > { %1914 = vst [vmem:[%s607_s30] sm:$0xf] %v1913_v33  ;;  %v2615_v34 = vpack.c.bf16 %v1913_v33, %v1913_v33 }
 0x398   : > { %v1923_v47 = vshrl.u32 %v2615_v34, 16  ;;  %v1926_v36 = vshll.u32 %v2615_v34, 16 }
 0x39a   : > { %v1925_v35 = vrot.slane %v1923_v47, 7 }
 0x39c   : > { %v1928_v38 = vor.u32 %v1926_v36, %v1925_v35 }
 0x39e   : > { %v1934_v39 = vsel %vm1932_vm13, %v1928_v38, %v1933_v37 }
 0x39f   : > { %1935 = vst [vmem:[#allocation4] sm:$0x7] %v1934_v39 }
 0x3a6   : > { %v1939_v40 = vld [vmem:[#allocation4] sm:$0xc] }
 0x3a7   : > { %v1940_v41 = vsel %vm1938_vm1, 0, %v1939_v40 }
 0x3a8   : > { %1941 = vst [vmem:[#allocation4] sm:$0xc] %v1940_v41 }
 0x3af   : > { %v1942_v43 = vld [vmem:[#allocation4] sm:$0xf] }
 0x3b0   : > { %2954 = vmatmul.mubr.bf16.vlgmr.msra.gmra.mxu1 %v1942_v43  ;;  %2974 = vmatmul.mubr.bf16.vlgmr.msra.gmra.mxu0 %v1942_v43 }
 0x3b1   : > { %2978 = vmatpush3.bf16.msra.mxu1 %v3145_v42  ;;  %2993 = vmatprep.mubr.msk.bf16.mxu1 %vm3284_vm0, %v3283_v0 }
 0x3b2   : > { %2979 = vmatprep.subr.bf16.mxu1 %v3283_v0 }
 0x3b5   : > { %2980 = vmatpush3.bf16.msra.mxu1 %v3146_v44 }
 0x3b6   : > { %2981 = vmatprep.subr.bf16.mxu1 %v3283_v0 }
 0x3b9   : > { %2982 = vmatpush3.bf16.msra.mxu1 %v3147_v10 }
 0x3ba   : > { %2983 = vmatprep.subr.bf16.mxu1 %v3283_v0 }
 0x3bd   : > { %2984 = vmatpush3.bf16.msra.mxu1 %v3148_v45 }
 0x3be   : > { %2985 = vmatprep.subr.bf16.mxu1 %v3283_v0 }
 0x3c1   : > { %2986 = vmatpush3.bf16.msra.mxu1 %v3149_v46 }
 0x3c2   : > { %2987 = vmatprep.subr.bf16.mxu1 %v3283_v0 }
 0x3c5   : > { %2988 = vmatpush3.bf16.msra.mxu1 %v3150_v48 }
 0x3c6   : > { %2989 = vmatprep.subr.bf16.mxu1 %v3283_v0 }
 0x3c9   : > { %2990 = vmatpush3.bf16.msra.mxu1 %v3151_v49 }
 0x3ca   : > { %2991 = vmatprep.subr.bf16.mxu1 %v3283_v0 }
 0x3cd   : > { %2992 = vmatpush3.bf16.msra.mxu1 %v3152_v50 }
 0x3d0   : > { %2994 = vmatmul.mubr.bf16.vlgmr.msra.gmra.mxu1 %v1942_v43 }
 0x470   : > { %v2041_v51 = vpop.f32.mrf.mxu1  ;;  %v2146_v52 = vpop.f32.mrf.mxu0 }
 0x471   : > { %v2258_v59 = vrot.slane %v2146_v52, 1 }
 0x472   : > { %v2955_v53 = vpop.f32.mrf.mxu1  ;;  %v2975_v54 = vpop.f32.mrf.mxu0 }
 0x473   : > { %v2260_v62 = vadd.f32 %v2258_v59, %v2041_v51 }
 0x474   : > { %v2044_v55 = vpop.f32.mrf.mxu1  ;;  %v2149_v56 = vpop.f32.mrf.mxu0 }
 0x476   : > { %v2956_v57 = vpop.f32.mrf.mxu1  ;;  %v2976_v58 = vpop.f32.mrf.mxu0 }
 0x490   : > { %v2251_v61 = vpop.f32.mrf.mxu1 }
 0x491   : > { %v2262_v28 = vrot.slane %v2251_v61, 2 }
 0x492   : > { %v2995_v0 = vpop.f32.mrf.mxu1 }
 0x493   : > { %v2264_v60 = vadd.f32 %v2262_v28, %v2260_v62 }
 0x494   : > { %v2254_v2 = vpop.f32.mrf.mxu1 }
 0x495   : > { %v2272_v3 = vmul.f32 %v2607_v63, %v2264_v60 }
 0x496   : > { %v2996_v4 = vpop.f32.mrf.mxu1 }
 0x497   : > { %v2280_v5 = vadd.f32 %v2608_v1, %v2272_v3 }
 0x499   : > { %v2281_v6 = vmax.f32 %v2280_v5, 0.0 }
 0x49b   : > { %2282 = vst [vmem:[#allocation5] sm:$0xf] %v2281_v6 }
 0x4a2   : > { %v2283_v7 = vld [vmem:[#allocation5] ss:$2 sm:$0x3]  ;;  %v2284_v8 = vld [vmem:[#allocation5 + $0x1] ss:$2 sm:$0x3] }
 0x4a3   : > { %v2285_v9 = vmax.f32 %v2283_v7, %v2284_v8 }
 0x4a5   : > { %2286 = vst [vmem:[%s611_s26] sm:$0x3] %v2285_v9 }
 0x4a6 PF: > { %s30_s21 = sadd.s32 1, %s3275_s21  }
 0x4a7   : > { %p27_p3 = scmp.ge.s32.totalorder %s30_s21, 4  }
 0x4a9   :  { %29 = sbr.rel (!%p27_p3) target bundleno = 5 (0x5), region = 166 }
 0x4ae   :  { %2350 = vsyncpa [#allocation7], 1 }
 0x4af   :  { %2352 = vsyncpa [#allocation7 + $0x1], 1 }
 0x4b0   :  { %2353 = vsyncpa [#allocation9], 1 }
 0x4b1   :  { %2354 = vsyncpa [#allocation12], 1 }

</bundles_post_ra>
